<compile_context>
chip_gen: v7x
topology: tpu7x:2x2x1
jax: 0.10.0
libtpu: 0.0.40
codegen_flags: <defaults>
</compile_context>

<pallas_src>
import jax
import jax.numpy as jnp
import numpy as np
from jax.experimental import pallas as pl
from jax.experimental.pallas import tpu as pltpu

# --- hyperparameters implied by the module ---
vocab_size = 32
input_dim = 32
hidden_dim = 32
num_layers = 2
output_dim = 8
p_dropout = 0.5        # eval-mode -> identity
pad = 0
max_len = 8
batch = 2


# ------------------------- fused Pallas kernel -------------------------

def _fused_bilstm_kernel(x_ref, wx0_ref, wh0_ref, b0_ref,
                         wx1_ref, wh1_ref, b1_ref,
                         wout_ref, bout_ref,
                         out_ref, y_scr):
    """Whole model (both bi-LSTM layers + final linear) in one invocation.

    x_ref   : (S*B, D)   time-major, flattened embedded tokens
    wx{l}   : (in, 8H)   packed input->gates weights (fwd/bwd interleaved per gate)
    wh{l}   : (2H, 8H)   packed recurrent weights (block-diagonal per gate)
    b{l}    : (1, 8H)    packed bias (b_ih + b_hh)
    wout    : (2H, out)  linear weight (pre-transposed)
    bout    : (1, out)
    out_ref : (B, out)
    y_scr   : (S*B, 2H)  VMEM scratch for layer-0 activations (next layer input)
    """
    SB = x_ref.shape[0]
    H2 = y_scr.shape[-1]          # 2H
    H = H2 // 2
    G = 4 * H2                    # 8H
    B = out_ref.shape[0]
    S = SB // B

    # Per 2H-wide gate block: first H lanes belong to the forward direction
    # (take x-gates of time t), last H lanes to the backward direction (take
    # x-gates of time S-1-t).  Built once, reused by both layers.
    lane = jax.lax.broadcasted_iota(jnp.int32, (1, G), 1)
    fwd_mask = (lane % H2) < H

    def run_layer(x_flat, wx_ref, wh_ref, b_ref, write_y):
        # Input projection for all timesteps in one matmul (bias folded in).
        gx = (jnp.dot(x_flat, wx_ref[...], preferred_element_type=jnp.float32)
              + b_ref[...])                                  # (S*B, 8H)
        wh = wh_ref[...]                                     # (2H, 8H)
        h = jnp.zeros((B, H2), jnp.float32)                  # [h_fwd | h_bwd]
        c = jnp.zeros((B, H2), jnp.float32)
        # Fully-unrolled time loop (S == 8): all slices/stores use static indices.
        for t in range(S):
            s_rev = S - 1 - t
            gxt = jnp.where(fwd_mask,
                            gx[t * B:(t + 1) * B, :],
                            gx[s_rev * B:(s_rev + 1) * B, :])        # (B, 8H)
            gates = gxt + jnp.dot(h, wh, preferred_element_type=jnp.float32)
            i = jax.nn.sigmoid(gates[:, 0:H2])
            f = jax.nn.sigmoid(gates[:, H2:2 * H2])
            g = jnp.tanh(gates[:, 2 * H2:3 * H2])
            o = jax.nn.sigmoid(gates[:, 3 * H2:4 * H2])
            c = f * c + i * g
            h = o * jnp.tanh(c)
            if write_y:
                # layer output at time t (fwd half) / time S-1-t (bwd half)
                y_scr[t * B:(t + 1) * B, 0:H] = h[:, 0:H]
                y_scr[s_rev * B:(s_rev + 1) * B, H:H2] = h[:, H:H2]
        return h                     # (B, 2H) = [fwd final | bwd final]

    # Layer 0: writes its (S, B, 2H) output into VMEM scratch.
    run_layer(x_ref[...], wx0_ref, wh0_ref, b0_ref, write_y=True)
    # Layer 1: consumes the scratch; its final hidden is what the model uses.
    hidden = run_layer(y_scr[...], wx1_ref, wh1_ref, b1_ref, write_y=False)

    # hidden == concat(hidden[-2], hidden[-1]) in PyTorch terms.
    # TODO(synk): nn.Dropout / inter-layer LSTM dropout are train-only; eval identity.
    out_ref[...] = (jnp.dot(hidden, wout_ref[...],
                            preferred_element_type=jnp.float32) + bout_ref[...])


# ------------------------- weight packing (wrapper-side, done once) ----------

def _pack_wx(w_ih_f, w_ih_b, H):
    """(4H,in) PyTorch fwd/bwd -> (in, 8H) gate-major [i_f,i_b,f_f,f_b,...]."""
    in_size = w_ih_f.shape[1]
    wf = jnp.transpose(w_ih_f.reshape(4, H, in_size), (0, 2, 1))   # (4, in, H)
    wb = jnp.transpose(w_ih_b.reshape(4, H, in_size), (0, 2, 1))
    per_gate = jnp.concatenate([wf, wb], axis=2)                   # (4, in, 2H)
    return jnp.transpose(per_gate, (1, 0, 2)).reshape(in_size, 8 * H)


def _pack_wh(w_hh_f, w_hh_b, H):
    """(4H,H) fwd/bwd -> (2H, 8H) block-diagonal per gate."""
    whf = jnp.transpose(w_hh_f.reshape(4, H, H), (0, 2, 1))        # (4, H, H)
    whb = jnp.transpose(w_hh_b.reshape(4, H, H), (0, 2, 1))
    z = jnp.zeros((4, H, H), jnp.float32)
    top = jnp.concatenate([whf, z], axis=2)                        # rows for h_fwd
    bot = jnp.concatenate([z, whb], axis=2)                        # rows for h_bwd
    per_gate = jnp.concatenate([top, bot], axis=1)                 # (4, 2H, 2H)
    return jnp.transpose(per_gate, (1, 0, 2)).reshape(2 * H, 8 * H)


def _pack_b(b_ih_f, b_hh_f, b_ih_b, b_hh_b, H):
    bf = (b_ih_f + b_hh_f).reshape(4, H)
    bb = (b_ih_b + b_hh_b).reshape(4, H)
    return jnp.concatenate([bf, bb], axis=1).reshape(1, 8 * H)


# ------------------------- model forward -------------------------

@jax.jit
def model_forward(params, tokens):
    # Embedding lookup (glue); padding_idx handled by zeroed row in the table.
    emb = jnp.take(params["embedding"], tokens, axis=0).astype(jnp.float32)  # (B,S,D)
    B, S, D = emb.shape
    x = jnp.transpose(emb, (1, 0, 2)).reshape(S * B, D)   # time-major, flattened

    packed = []
    for l in range(num_layers):
        w_ih_f, w_hh_f, b_ih_f, b_hh_f = params["lstm"][l]["fwd"]
        w_ih_b, w_hh_b, b_ih_b, b_hh_b = params["lstm"][l]["bwd"]
        packed += [_pack_wx(w_ih_f, w_ih_b, hidden_dim),
                   _pack_wh(w_hh_f, w_hh_b, hidden_dim),
                   _pack_b(b_ih_f, b_hh_f, b_ih_b, b_hh_b, hidden_dim)]

    wout = jnp.transpose(params["w_out"])                 # (2H, out)
    bout = params["b_out"].reshape(1, output_dim)

    return pl.pallas_call(
        _fused_bilstm_kernel,
        out_shape=jax.ShapeDtypeStruct((B, output_dim), jnp.float32),
        scratch_shapes=[pltpu.VMEM((S * B, 2 * hidden_dim), jnp.float32)],
    )(x, *packed, wout, bout)


# ------------------------- pure-JAX reference (correctness check) ------------

def _lstm_ref(x_seq, w_ih, w_hh, b_ih, b_hh):
    H = w_hh.shape[1]
    B = x_seq.shape[1]

    def step(carry, xt):
        h, c = carry
        gates = xt @ w_ih.T + h @ w_hh.T + b_ih + b_hh
        i = jax.nn.sigmoid(gates[:, :H])
        f = jax.nn.sigmoid(gates[:, H:2 * H])
        g = jnp.tanh(gates[:, 2 * H:3 * H])
        o = jax.nn.sigmoid(gates[:, 3 * H:])
        c = f * c + i * g
        h = o * jnp.tanh(c)
        return (h, c), h

    (h, _), ys = jax.lax.scan(step, (jnp.zeros((B, H)), jnp.zeros((B, H))), x_seq)
    return ys, h


def model_forward_ref(params, tokens):
    emb = jnp.take(params["embedding"], tokens, axis=0).astype(jnp.float32)
    x = jnp.transpose(emb, (1, 0, 2))
    h_f_last = h_b_last = None
    for l in range(num_layers):
        y_f, h_f = _lstm_ref(x, *params["lstm"][l]["fwd"])
        y_b_rev, h_b = _lstm_ref(x[::-1], *params["lstm"][l]["bwd"])
        x = jnp.concatenate([y_f, y_b_rev[::-1]], axis=-1)
        h_f_last, h_b_last = h_f, h_b
    hidden = jnp.concatenate([h_f_last, h_b_last], axis=1)
    return hidden @ params["w_out"].T + params["b_out"]


# ------------------------- deterministic parameter init ----------------------

def init_params(key):
    keys = iter(jax.random.split(key, 64))
    emb = jax.random.normal(next(keys), (vocab_size, input_dim), jnp.float32)
    emb = emb.at[pad].set(0.0)                         # padding_idx row = 0
    k = 1.0 / np.sqrt(hidden_dim)
    lstm = []
    for l in range(num_layers):
        in_size = input_dim if l == 0 else 2 * hidden_dim
        layer = {}
        for d in ("fwd", "bwd"):
            w_ih = jax.random.uniform(next(keys), (4 * hidden_dim, in_size),
                                      jnp.float32, -k, k)
            w_hh = jax.random.uniform(next(keys), (4 * hidden_dim, hidden_dim),
                                      jnp.float32, -k, k)
            b_ih = jax.random.uniform(next(keys), (4 * hidden_dim,),
                                      jnp.float32, -k, k)
            b_hh = jax.random.uniform(next(keys), (4 * hidden_dim,),
                                      jnp.float32, -k, k)
            layer[d] = (w_ih, w_hh, b_ih, b_hh)
        lstm.append(layer)
    k2 = 1.0 / np.sqrt(2 * hidden_dim)
    w_out = jax.random.uniform(next(keys), (output_dim, 2 * hidden_dim),
                               jnp.float32, -k2, k2)
    b_out = jax.random.uniform(next(keys), (output_dim,), jnp.float32, -k2, k2)
    return {"embedding": emb, "lstm": lstm, "w_out": w_out, "b_out": b_out}


if __name__ == "__main__":
    root = jax.random.PRNGKey(0)
    kp, kt = jax.random.split(root)
    params = init_params(kp)

    # token batch (batch, max_len); shorter "sentences" padded with pad=0
    tokens = jax.random.randint(kt, (batch, max_len), 0, vocab_size, jnp.int32)
    tokens = tokens.at[0, 6:].set(pad)
    tokens = tokens.at[1, 5:].set(pad)

    out = jax.block_until_ready(model_forward(params, tokens))
    ref = jax.block_until_ready(model_forward_ref(params, tokens))
    assert out.shape == (batch, output_dim)
    np.testing.assert_allclose(np.asarray(out), np.asarray(ref),
                               rtol=1e-3, atol=1e-3)
    print("KERNEL_OK")
</pallas_src>

<mosaic_0001>
module attributes {stable_mosaic.version = 11 : i64} {
  func.func @_fused_bilstm_kernel(%arg0: memref<16x32xf32, #tpu.memory_space<vmem>>, %arg1: memref<32x256xf32, #tpu.memory_space<vmem>>, %arg2: memref<64x256xf32, #tpu.memory_space<vmem>>, %arg3: memref<1x256xf32, #tpu.memory_space<vmem>>, %arg4: memref<64x256xf32, #tpu.memory_space<vmem>>, %arg5: memref<64x256xf32, #tpu.memory_space<vmem>>, %arg6: memref<1x256xf32, #tpu.memory_space<vmem>>, %arg7: memref<64x8xf32, #tpu.memory_space<vmem>>, %arg8: memref<1x8xf32, #tpu.memory_space<vmem>>, %arg9: memref<2x8xf32, #tpu.memory_space<vmem>>, %arg10: memref<16x64xf32, #tpu.memory_space<vmem>>) attributes {dimension_semantics = [], scalar_prefetch = 0 : i64, scratch_operands = 1 : i64, tpu.core_type = #tpu.core_type<tc>} {
    %0 = tpu.iota {dimensions = array<i32: 1>} : vector<1x256xi32>
    %c64_i32 = arith.constant 64 : i32
    %c0_i32 = arith.constant 0 : i32
    %1 = arith.cmpi eq, %c64_i32, %c0_i32 : i32
    %c1_i32 = arith.constant 1 : i32
    %2 = arith.select %1, %c1_i32, %c64_i32 : i32
    %3 = vector.broadcast %2 : i32 to vector<1x256xi32>
    %4 = arith.remsi %0, %3 : vector<1x256xi32>
    %c0_i32_0 = arith.constant 0 : i32
    %5 = vector.broadcast %c0_i32_0 : i32 to vector<1x256xi32>
    %6 = arith.cmpi ne, %4, %5 : vector<1x256xi32>
    %c0_i32_1 = arith.constant 0 : i32
    %7 = vector.broadcast %c0_i32_1 : i32 to vector<1x256xi32>
    %8 = arith.cmpi slt, %4, %7 : vector<1x256xi32>
    %c0_i32_2 = arith.constant 0 : i32
    %9 = arith.cmpi slt, %2, %c0_i32_2 : i32
    %10 = vector.broadcast %9 : i1 to vector<1x256xi1>
    %11 = vector.broadcast %10 : vector<1x256xi1> to vector<1x256xi1>
    %12 = arith.xori %8, %11 : vector<1x256xi1>
    %13 = arith.andi %12, %6 : vector<1x256xi1>
    %14 = vector.broadcast %2 : i32 to vector<1x256xi32>
    %15 = arith.addi %4, %14 : vector<1x256xi32>
    %16 = arith.select %13, %15, %4 : vector<1x256xi1>, vector<1x256xi32>
    %c32_i32 = arith.constant 32 : i32
    %17 = vector.broadcast %c32_i32 : i32 to vector<1x256xi32>
    %18 = arith.cmpi slt, %16, %17 : vector<1x256xi32>
    %c0 = arith.constant 0 : index
    %c0_3 = arith.constant 0 : index
    %19 = vector.load %arg0[%c0, %c0_3] : memref<16x32xf32, #tpu.memory_space<vmem>>, vector<16x32xf32>
    %c0_4 = arith.constant 0 : index
    %c0_5 = arith.constant 0 : index
    %20 = vector.load %arg1[%c0_4, %c0_5] : memref<32x256xf32, #tpu.memory_space<vmem>>, vector<32x256xf32>
    %cst = arith.constant dense<0.000000e+00> : vector<16x256xf32>
    %21 = tpu.matmul %19, %20, %cst {dimension_numbers = #tpu.dot_dimension_numbers<[1], [0], [0], [1], [0, 0, 1, 1], [], []>} : vector<16x32xf32>, vector<32x256xf32>, vector<16x256xf32> -> vector<16x256xf32>
    %c0_6 = arith.constant 0 : index
    %c0_7 = arith.constant 0 : index
    %22 = vector.load %arg3[%c0_6, %c0_7] : memref<1x256xf32, #tpu.memory_space<vmem>>, vector<1x256xf32>
    %23 = vector.broadcast %22 : vector<1x256xf32> to vector<16x256xf32>
    %24 = arith.addf %21, %23 : vector<16x256xf32>
    %c0_8 = arith.constant 0 : index
    %c0_9 = arith.constant 0 : index
    %25 = vector.load %arg2[%c0_8, %c0_9] : memref<64x256xf32, #tpu.memory_space<vmem>>, vector<64x256xf32>
    %cst_10 = arith.constant 0.000000e+00 : f32
    %26 = vector.broadcast %cst_10 : f32 to vector<2x64xf32>
    %cst_11 = arith.constant 0.000000e+00 : f32
    %27 = vector.broadcast %cst_11 : f32 to vector<2x64xf32>
    %28 = vector.extract_strided_slice %24 {offsets = [0, 0], sizes = [2, 256], strides = [1, 1]} : vector<16x256xf32> to vector<2x256xf32>
    %29 = vector.extract_strided_slice %24 {offsets = [14, 0], sizes = [2, 256], strides = [1, 1]} : vector<16x256xf32> to vector<2x256xf32>
    %30 = vector.shape_cast %18 : vector<1x256xi1> to vector<1x256xi1>
    %31 = vector.broadcast %30 : vector<1x256xi1> to vector<2x256xi1>
    %32 = arith.select %31, %28, %29 : vector<2x256xi1>, vector<2x256xf32>
    %cst_12 = arith.constant dense<0.000000e+00> : vector<2x256xf32>
    %33 = tpu.matmul %26, %25, %cst_12 {dimension_numbers = #tpu.dot_dimension_numbers<[1], [0], [0], [1], [0, 0, 1, 1], [], []>} : vector<2x64xf32>, vector<64x256xf32>, vector<2x256xf32> -> vector<2x256xf32>
    %34 = arith.addf %32, %33 : vector<2x256xf32>
    %35 = vector.extract_strided_slice %34 {offsets = [0, 0], sizes = [2, 64], strides = [1, 1]} : vector<2x256xf32> to vector<2x64xf32>
    %36 = arith.negf %35 : vector<2x64xf32>
    %37 = math.exp %36 : vector<2x64xf32>
    %cst_13 = arith.constant 1.000000e+00 : f32
    %38 = vector.broadcast %cst_13 : f32 to vector<2x64xf32>
    %39 = arith.addf %38, %37 : vector<2x64xf32>
    %40 = arith.divf %38, %39 : vector<2x64xf32>
    %41 = vector.extract_strided_slice %34 {offsets = [0, 64], sizes = [2, 64], strides = [1, 1]} : vector<2x256xf32> to vector<2x64xf32>
    %42 = arith.negf %41 : vector<2x64xf32>
    %43 = math.exp %42 : vector<2x64xf32>
    %cst_14 = arith.constant 1.000000e+00 : f32
    %44 = vector.broadcast %cst_14 : f32 to vector<2x64xf32>
    %45 = arith.addf %44, %43 : vector<2x64xf32>
    %46 = arith.divf %44, %45 : vector<2x64xf32>
    %47 = vector.extract_strided_slice %34 {offsets = [0, 128], sizes = [2, 64], strides = [1, 1]} : vector<2x256xf32> to vector<2x64xf32>
    %48 = math.tanh %47 : vector<2x64xf32>
    %49 = vector.extract_strided_slice %34 {offsets = [0, 192], sizes = [2, 64], strides = [1, 1]} : vector<2x256xf32> to vector<2x64xf32>
    %50 = arith.negf %49 : vector<2x64xf32>
    %51 = math.exp %50 : vector<2x64xf32>
    %cst_15 = arith.constant 1.000000e+00 : f32
    %52 = vector.broadcast %cst_15 : f32 to vector<2x64xf32>
    %53 = arith.addf %52, %51 : vector<2x64xf32>
    %54 = arith.divf %52, %53 : vector<2x64xf32>
    %55 = arith.mulf %46, %27 : vector<2x64xf32>
    %56 = arith.mulf %40, %48 : vector<2x64xf32>
    %57 = arith.addf %55, %56 : vector<2x64xf32>
    %58 = math.tanh %57 : vector<2x64xf32>
    %59 = arith.mulf %54, %58 : vector<2x64xf32>
    %60 = vector.extract_strided_slice %59 {offsets = [0, 0], sizes = [2, 32], strides = [1, 1]} : vector<2x64xf32> to vector<2x32xf32>
    %c0_16 = arith.constant 0 : index
    %c0_17 = arith.constant 0 : index
    %61 = vector.load %arg10[%c0_16, %c0_17] : memref<16x64xf32, #tpu.memory_space<vmem>>, vector<2x32xf32>
    tpu.vector_store %arg10[%c0_16, %c0_17], %60 {strides = array<i32>} : memref<16x64xf32, #tpu.memory_space<vmem>>, vector<2x32xf32>,
    %62 = vector.extract_strided_slice %59 {offsets = [0, 32], sizes = [2, 32], strides = [1, 1]} : vector<2x64xf32> to vector<2x32xf32>
    %c14 = arith.constant 14 : index
    %c32 = arith.constant 32 : index
    %63 = vector.load %arg10[%c14, %c32] : memref<16x64xf32, #tpu.memory_space<vmem>>, vector<2x32xf32>
    tpu.vector_store %arg10[%c14, %c32], %62 {strides = array<i32>} : memref<16x64xf32, #tpu.memory_space<vmem>>, vector<2x32xf32>,
    %64 = vector.extract_strided_slice %24 {offsets = [2, 0], sizes = [2, 256], strides = [1, 1]} : vector<16x256xf32> to vector<2x256xf32>
    %65 = vector.extract_strided_slice %24 {offsets = [12, 0], sizes = [2, 256], strides = [1, 1]} : vector<16x256xf32> to vector<2x256xf32>
    %66 = vector.shape_cast %18 : vector<1x256xi1> to vector<1x256xi1>
    %67 = vector.broadcast %66 : vector<1x256xi1> to vector<2x256xi1>
    %68 = arith.select %67, %64, %65 : vector<2x256xi1>, vector<2x256xf32>
    %cst_18 = arith.constant dense<0.000000e+00> : vector<2x256xf32>
    %69 = tpu.matmul %59, %25, %cst_18 {dimension_numbers = #tpu.dot_dimension_numbers<[1], [0], [0], [1], [0, 0, 1, 1], [], []>} : vector<2x64xf32>, vector<64x256xf32>, vector<2x256xf32> -> vector<2x256xf32>
    %70 = arith.addf %68, %69 : vector<2x256xf32>
    %71 = vector.extract_strided_slice %70 {offsets = [0, 0], sizes = [2, 64], strides = [1, 1]} : vector<2x256xf32> to vector<2x64xf32>
    %72 = arith.negf %71 : vector<2x64xf32>
    %73 = math.exp %72 : vector<2x64xf32>
    %cst_19 = arith.constant 1.000000e+00 : f32
    %74 = vector.broadcast %cst_19 : f32 to vector<2x64xf32>
    %75 = arith.addf %74, %73 : vector<2x64xf32>
    %76 = arith.divf %74, %75 : vector<2x64xf32>
    %77 = vector.extract_strided_slice %70 {offsets = [0, 64], sizes = [2, 64], strides = [1, 1]} : vector<2x256xf32> to vector<2x64xf32>
    %78 = arith.negf %77 : vector<2x64xf32>
    %79 = math.exp %78 : vector<2x64xf32>
    %cst_20 = arith.constant 1.000000e+00 : f32
    %80 = vector.broadcast %cst_20 : f32 to vector<2x64xf32>
    %81 = arith.addf %80, %79 : vector<2x64xf32>
    %82 = arith.divf %80, %81 : vector<2x64xf32>
    %83 = vector.extract_strided_slice %70 {offsets = [0, 128], sizes = [2, 64], strides = [1, 1]} : vector<2x256xf32> to vector<2x64xf32>
    %84 = math.tanh %83 : vector<2x64xf32>
    %85 = vector.extract_strided_slice %70 {offsets = [0, 192], sizes = [2, 64], strides = [1, 1]} : vector<2x256xf32> to vector<2x64xf32>
    %86 = arith.negf %85 : vector<2x64xf32>
    %87 = math.exp %86 : vector<2x64xf32>
    %cst_21 = arith.constant 1.000000e+00 : f32
    %88 = vector.broadcast %cst_21 : f32 to vector<2x64xf32>
    %89 = arith.addf %88, %87 : vector<2x64xf32>
    %90 = arith.divf %88, %89 : vector<2x64xf32>
    %91 = arith.mulf %82, %57 : vector<2x64xf32>
    %92 = arith.mulf %76, %84 : vector<2x64xf32>
    %93 = arith.addf %91, %92 : vector<2x64xf32>
    %94 = math.tanh %93 : vector<2x64xf32>
    %95 = arith.mulf %90, %94 : vector<2x64xf32>
    %96 = vector.extract_strided_slice %95 {offsets = [0, 0], sizes = [2, 32], strides = [1, 1]} : vector<2x64xf32> to vector<2x32xf32>
    %c2 = arith.constant 2 : index
    %c0_22 = arith.constant 0 : index
    %97 = vector.load %arg10[%c2, %c0_22] : memref<16x64xf32, #tpu.memory_space<vmem>>, vector<2x32xf32>
    tpu.vector_store %arg10[%c2, %c0_22], %96 {strides = array<i32>} : memref<16x64xf32, #tpu.memory_space<vmem>>, vector<2x32xf32>,
    %98 = vector.extract_strided_slice %95 {offsets = [0, 32], sizes = [2, 32], strides = [1, 1]} : vector<2x64xf32> to vector<2x32xf32>
    %c12 = arith.constant 12 : index
    %c32_23 = arith.constant 32 : index
    %99 = vector.load %arg10[%c12, %c32_23] : memref<16x64xf32, #tpu.memory_space<vmem>>, vector<2x32xf32>
    tpu.vector_store %arg10[%c12, %c32_23], %98 {strides = array<i32>} : memref<16x64xf32, #tpu.memory_space<vmem>>, vector<2x32xf32>,
    %100 = vector.extract_strided_slice %24 {offsets = [4, 0], sizes = [2, 256], strides = [1, 1]} : vector<16x256xf32> to vector<2x256xf32>
    %101 = vector.extract_strided_slice %24 {offsets = [10, 0], sizes = [2, 256], strides = [1, 1]} : vector<16x256xf32> to vector<2x256xf32>
    %102 = vector.shape_cast %18 : vector<1x256xi1> to vector<1x256xi1>
    %103 = vector.broadcast %102 : vector<1x256xi1> to vector<2x256xi1>
    %104 = arith.select %103, %100, %101 : vector<2x256xi1>, vector<2x256xf32>
    %cst_24 = arith.constant dense<0.000000e+00> : vector<2x256xf32>
    %105 = tpu.matmul %95, %25, %cst_24 {dimension_numbers = #tpu.dot_dimension_numbers<[1], [0], [0], [1], [0, 0, 1, 1], [], []>} : vector<2x64xf32>, vector<64x256xf32>, vector<2x256xf32> -> vector<2x256xf32>
    %106 = arith.addf %104, %105 : vector<2x256xf32>
    %107 = vector.extract_strided_slice %106 {offsets = [0, 0], sizes = [2, 64], strides = [1, 1]} : vector<2x256xf32> to vector<2x64xf32>
    %108 = arith.negf %107 : vector<2x64xf32>
    %109 = math.exp %108 : vector<2x64xf32>
    %cst_25 = arith.constant 1.000000e+00 : f32
    %110 = vector.broadcast %cst_25 : f32 to vector<2x64xf32>
    %111 = arith.addf %110, %109 : vector<2x64xf32>
    %112 = arith.divf %110, %111 : vector<2x64xf32>
    %113 = vector.extract_strided_slice %106 {offsets = [0, 64], sizes = [2, 64], strides = [1, 1]} : vector<2x256xf32> to vector<2x64xf32>
    %114 = arith.negf %113 : vector<2x64xf32>
    %115 = math.exp %114 : vector<2x64xf32>
    %cst_26 = arith.constant 1.000000e+00 : f32
    %116 = vector.broadcast %cst_26 : f32 to vector<2x64xf32>
    %117 = arith.addf %116, %115 : vector<2x64xf32>
    %118 = arith.divf %116, %117 : vector<2x64xf32>
    %119 = vector.extract_strided_slice %106 {offsets = [0, 128], sizes = [2, 64], strides = [1, 1]} : vector<2x256xf32> to vector<2x64xf32>
    %120 = math.tanh %119 : vector<2x64xf32>
    %121 = vector.extract_strided_slice %106 {offsets = [0, 192], sizes = [2, 64], strides = [1, 1]} : vector<2x256xf32> to vector<2x64xf32>
    %122 = arith.negf %121 : vector<2x64xf32>
    %123 = math.exp %122 : vector<2x64xf32>
    %cst_27 = arith.constant 1.000000e+00 : f32
    %124 = vector.broadcast %cst_27 : f32 to vector<2x64xf32>
    %125 = arith.addf %124, %123 : vector<2x64xf32>
    %126 = arith.divf %124, %125 : vector<2x64xf32>
    %127 = arith.mulf %118, %93 : vector<2x64xf32>
    %128 = arith.mulf %112, %120 : vector<2x64xf32>
    %129 = arith.addf %127, %128 : vector<2x64xf32>
    %130 = math.tanh %129 : vector<2x64xf32>
    %131 = arith.mulf %126, %130 : vector<2x64xf32>
    %132 = vector.extract_strided_slice %131 {offsets = [0, 0], sizes = [2, 32], strides = [1, 1]} : vector<2x64xf32> to vector<2x32xf32>
    %c4 = arith.constant 4 : index
    %c0_28 = arith.constant 0 : index
    %133 = vector.load %arg10[%c4, %c0_28] : memref<16x64xf32, #tpu.memory_space<vmem>>, vector<2x32xf32>
    tpu.vector_store %arg10[%c4, %c0_28], %132 {strides = array<i32>} : memref<16x64xf32, #tpu.memory_space<vmem>>, vector<2x32xf32>,
    %134 = vector.extract_strided_slice %131 {offsets = [0, 32], sizes = [2, 32], strides = [1, 1]} : vector<2x64xf32> to vector<2x32xf32>
    %c10 = arith.constant 10 : index
    %c32_29 = arith.constant 32 : index
    %135 = vector.load %arg10[%c10, %c32_29] : memref<16x64xf32, #tpu.memory_space<vmem>>, vector<2x32xf32>
    tpu.vector_store %arg10[%c10, %c32_29], %134 {strides = array<i32>} : memref<16x64xf32, #tpu.memory_space<vmem>>, vector<2x32xf32>,
    %136 = vector.extract_strided_slice %24 {offsets = [6, 0], sizes = [2, 256], strides = [1, 1]} : vector<16x256xf32> to vector<2x256xf32>
    %137 = vector.extract_strided_slice %24 {offsets = [8, 0], sizes = [2, 256], strides = [1, 1]} : vector<16x256xf32> to vector<2x256xf32>
    %138 = vector.shape_cast %18 : vector<1x256xi1> to vector<1x256xi1>
    %139 = vector.broadcast %138 : vector<1x256xi1> to vector<2x256xi1>
    %140 = arith.select %139, %136, %137 : vector<2x256xi1>, vector<2x256xf32>
    %cst_30 = arith.constant dense<0.000000e+00> : vector<2x256xf32>
    %141 = tpu.matmul %131, %25, %cst_30 {dimension_numbers = #tpu.dot_dimension_numbers<[1], [0], [0], [1], [0, 0, 1, 1], [], []>} : vector<2x64xf32>, vector<64x256xf32>, vector<2x256xf32> -> vector<2x256xf32>
    %142 = arith.addf %140, %141 : vector<2x256xf32>
    %143 = vector.extract_strided_slice %142 {offsets = [0, 0], sizes = [2, 64], strides = [1, 1]} : vector<2x256xf32> to vector<2x64xf32>
    %144 = arith.negf %143 : vector<2x64xf32>
    %145 = math.exp %144 : vector<2x64xf32>
    %cst_31 = arith.constant 1.000000e+00 : f32
    %146 = vector.broadcast %cst_31 : f32 to vector<2x64xf32>
    %147 = arith.addf %146, %145 : vector<2x64xf32>
    %148 = arith.divf %146, %147 : vector<2x64xf32>
    %149 = vector.extract_strided_slice %142 {offsets = [0, 64], sizes = [2, 64], strides = [1, 1]} : vector<2x256xf32> to vector<2x64xf32>
    %150 = arith.negf %149 : vector<2x64xf32>
    %151 = math.exp %150 : vector<2x64xf32>
    %cst_32 = arith.constant 1.000000e+00 : f32
    %152 = vector.broadcast %cst_32 : f32 to vector<2x64xf32>
    %153 = arith.addf %152, %151 : vector<2x64xf32>
    %154 = arith.divf %152, %153 : vector<2x64xf32>
    %155 = vector.extract_strided_slice %142 {offsets = [0, 128], sizes = [2, 64], strides = [1, 1]} : vector<2x256xf32> to vector<2x64xf32>
    %156 = math.tanh %155 : vector<2x64xf32>
    %157 = vector.extract_strided_slice %142 {offsets = [0, 192], sizes = [2, 64], strides = [1, 1]} : vector<2x256xf32> to vector<2x64xf32>
    %158 = arith.negf %157 : vector<2x64xf32>
    %159 = math.exp %158 : vector<2x64xf32>
    %cst_33 = arith.constant 1.000000e+00 : f32
    %160 = vector.broadcast %cst_33 : f32 to vector<2x64xf32>
    %161 = arith.addf %160, %159 : vector<2x64xf32>
    %162 = arith.divf %160, %161 : vector<2x64xf32>
    %163 = arith.mulf %154, %129 : vector<2x64xf32>
    %164 = arith.mulf %148, %156 : vector<2x64xf32>
    %165 = arith.addf %163, %164 : vector<2x64xf32>
    %166 = math.tanh %165 : vector<2x64xf32>
    %167 = arith.mulf %162, %166 : vector<2x64xf32>
    %168 = vector.extract_strided_slice %167 {offsets = [0, 0], sizes = [2, 32], strides = [1, 1]} : vector<2x64xf32> to vector<2x32xf32>
    %c6 = arith.constant 6 : index
    %c0_34 = arith.constant 0 : index
    %169 = vector.load %arg10[%c6, %c0_34] : memref<16x64xf32, #tpu.memory_space<vmem>>, vector<2x32xf32>
    tpu.vector_store %arg10[%c6, %c0_34], %168 {strides = array<i32>} : memref<16x64xf32, #tpu.memory_space<vmem>>, vector<2x32xf32>,
    %170 = vector.extract_strided_slice %167 {offsets = [0, 32], sizes = [2, 32], strides = [1, 1]} : vector<2x64xf32> to vector<2x32xf32>
    %c8 = arith.constant 8 : index
    %c32_35 = arith.constant 32 : index
    %171 = vector.load %arg10[%c8, %c32_35] : memref<16x64xf32, #tpu.memory_space<vmem>>, vector<2x32xf32>
    tpu.vector_store %arg10[%c8, %c32_35], %170 {strides = array<i32>} : memref<16x64xf32, #tpu.memory_space<vmem>>, vector<2x32xf32>,
    %172 = vector.extract_strided_slice %24 {offsets = [8, 0], sizes = [2, 256], strides = [1, 1]} : vector<16x256xf32> to vector<2x256xf32>
    %173 = vector.extract_strided_slice %24 {offsets = [6, 0], sizes = [2, 256], strides = [1, 1]} : vector<16x256xf32> to vector<2x256xf32>
    %174 = vector.shape_cast %18 : vector<1x256xi1> to vector<1x256xi1>
    %175 = vector.broadcast %174 : vector<1x256xi1> to vector<2x256xi1>
    %176 = arith.select %175, %172, %173 : vector<2x256xi1>, vector<2x256xf32>
    %cst_36 = arith.constant dense<0.000000e+00> : vector<2x256xf32>
    %177 = tpu.matmul %167, %25, %cst_36 {dimension_numbers = #tpu.dot_dimension_numbers<[1], [0], [0], [1], [0, 0, 1, 1], [], []>} : vector<2x64xf32>, vector<64x256xf32>, vector<2x256xf32> -> vector<2x256xf32>
    %178 = arith.addf %176, %177 : vector<2x256xf32>
    %179 = vector.extract_strided_slice %178 {offsets = [0, 0], sizes = [2, 64], strides = [1, 1]} : vector<2x256xf32> to vector<2x64xf32>
    %180 = arith.negf %179 : vector<2x64xf32>
    %181 = math.exp %180 : vector<2x64xf32>
    %cst_37 = arith.constant 1.000000e+00 : f32
    %182 = vector.broadcast %cst_37 : f32 to vector<2x64xf32>
    %183 = arith.addf %182, %181 : vector<2x64xf32>
    %184 = arith.divf %182, %183 : vector<2x64xf32>
    %185 = vector.extract_strided_slice %178 {offsets = [0, 64], sizes = [2, 64], strides = [1, 1]} : vector<2x256xf32> to vector<2x64xf32>
    %186 = arith.negf %185 : vector<2x64xf32>
    %187 = math.exp %186 : vector<2x64xf32>
    %cst_38 = arith.constant 1.000000e+00 : f32
    %188 = vector.broadcast %cst_38 : f32 to vector<2x64xf32>
    %189 = arith.addf %188, %187 : vector<2x64xf32>
    %190 = arith.divf %188, %189 : vector<2x64xf32>
    %191 = vector.extract_strided_slice %178 {offsets = [0, 128], sizes = [2, 64], strides = [1, 1]} : vector<2x256xf32> to vector<2x64xf32>
    %192 = math.tanh %191 : vector<2x64xf32>
    %193 = vector.extract_strided_slice %178 {offsets = [0, 192], sizes = [2, 64], strides = [1, 1]} : vector<2x256xf32> to vector<2x64xf32>
    %194 = arith.negf %193 : vector<2x64xf32>
    %195 = math.exp %194 : vector<2x64xf32>
    %cst_39 = arith.constant 1.000000e+00 : f32
    %196 = vector.broadcast %cst_39 : f32 to vector<2x64xf32>
    %197 = arith.addf %196, %195 : vector<2x64xf32>
    %198 = arith.divf %196, %197 : vector<2x64xf32>
    %199 = arith.mulf %190, %165 : vector<2x64xf32>
    %200 = arith.mulf %184, %192 : vector<2x64xf32>
    %201 = arith.addf %199, %200 : vector<2x64xf32>
    %202 = math.tanh %201 : vector<2x64xf32>
    %203 = arith.mulf %198, %202 : vector<2x64xf32>
    %204 = vector.extract_strided_slice %203 {offsets = [0, 0], sizes = [2, 32], strides = [1, 1]} : vector<2x64xf32> to vector<2x32xf32>
    %c8_40 = arith.constant 8 : index
    %c0_41 = arith.constant 0 : index
    %205 = vector.load %arg10[%c8_40, %c0_41] : memref<16x64xf32, #tpu.memory_space<vmem>>, vector<2x32xf32>
    tpu.vector_store %arg10[%c8_40, %c0_41], %204 {strides = array<i32>} : memref<16x64xf32, #tpu.memory_space<vmem>>, vector<2x32xf32>,
    %206 = vector.extract_strided_slice %203 {offsets = [0, 32], sizes = [2, 32], strides = [1, 1]} : vector<2x64xf32> to vector<2x32xf32>
    %c6_42 = arith.constant 6 : index
    %c32_43 = arith.constant 32 : index
    %207 = vector.load %arg10[%c6_42, %c32_43] : memref<16x64xf32, #tpu.memory_space<vmem>>, vector<2x32xf32>
    tpu.vector_store %arg10[%c6_42, %c32_43], %206 {strides = array<i32>} : memref<16x64xf32, #tpu.memory_space<vmem>>, vector<2x32xf32>,
    %208 = vector.extract_strided_slice %24 {offsets = [10, 0], sizes = [2, 256], strides = [1, 1]} : vector<16x256xf32> to vector<2x256xf32>
    %209 = vector.extract_strided_slice %24 {offsets = [4, 0], sizes = [2, 256], strides = [1, 1]} : vector<16x256xf32> to vector<2x256xf32>
    %210 = vector.shape_cast %18 : vector<1x256xi1> to vector<1x256xi1>
    %211 = vector.broadcast %210 : vector<1x256xi1> to vector<2x256xi1>
    %212 = arith.select %211, %208, %209 : vector<2x256xi1>, vector<2x256xf32>
    %cst_44 = arith.constant dense<0.000000e+00> : vector<2x256xf32>
    %213 = tpu.matmul %203, %25, %cst_44 {dimension_numbers = #tpu.dot_dimension_numbers<[1], [0], [0], [1], [0, 0, 1, 1], [], []>} : vector<2x64xf32>, vector<64x256xf32>, vector<2x256xf32> -> vector<2x256xf32>
    %214 = arith.addf %212, %213 : vector<2x256xf32>
    %215 = vector.extract_strided_slice %214 {offsets = [0, 0], sizes = [2, 64], strides = [1, 1]} : vector<2x256xf32> to vector<2x64xf32>
    %216 = arith.negf %215 : vector<2x64xf32>
    %217 = math.exp %216 : vector<2x64xf32>
    %cst_45 = arith.constant 1.000000e+00 : f32
    %218 = vector.broadcast %cst_45 : f32 to vector<2x64xf32>
    %219 = arith.addf %218, %217 : vector<2x64xf32>
    %220 = arith.divf %218, %219 : vector<2x64xf32>
    %221 = vector.extract_strided_slice %214 {offsets = [0, 64], sizes = [2, 64], strides = [1, 1]} : vector<2x256xf32> to vector<2x64xf32>
    %222 = arith.negf %221 : vector<2x64xf32>
    %223 = math.exp %222 : vector<2x64xf32>
    %cst_46 = arith.constant 1.000000e+00 : f32
    %224 = vector.broadcast %cst_46 : f32 to vector<2x64xf32>
    %225 = arith.addf %224, %223 : vector<2x64xf32>
    %226 = arith.divf %224, %225 : vector<2x64xf32>
    %227 = vector.extract_strided_slice %214 {offsets = [0, 128], sizes = [2, 64], strides = [1, 1]} : vector<2x256xf32> to vector<2x64xf32>
    %228 = math.tanh %227 : vector<2x64xf32>
    %229 = vector.extract_strided_slice %214 {offsets = [0, 192], sizes = [2, 64], strides = [1, 1]} : vector<2x256xf32> to vector<2x64xf32>
    %230 = arith.negf %229 : vector<2x64xf32>
    %231 = math.exp %230 : vector<2x64xf32>
    %cst_47 = arith.constant 1.000000e+00 : f32
    %232 = vector.broadcast %cst_47 : f32 to vector<2x64xf32>
    %233 = arith.addf %232, %231 : vector<2x64xf32>
    %234 = arith.divf %232, %233 : vector<2x64xf32>
    %235 = arith.mulf %226, %201 : vector<2x64xf32>
    %236 = arith.mulf %220, %228 : vector<2x64xf32>
    %237 = arith.addf %235, %236 : vector<2x64xf32>
    %238 = math.tanh %237 : vector<2x64xf32>
    %239 = arith.mulf %234, %238 : vector<2x64xf32>
    %240 = vector.extract_strided_slice %239 {offsets = [0, 0], sizes = [2, 32], strides = [1, 1]} : vector<2x64xf32> to vector<2x32xf32>
    %c10_48 = arith.constant 10 : index
    %c0_49 = arith.constant 0 : index
    %241 = vector.load %arg10[%c10_48, %c0_49] : memref<16x64xf32, #tpu.memory_space<vmem>>, vector<2x32xf32>
    tpu.vector_store %arg10[%c10_48, %c0_49], %240 {strides = array<i32>} : memref<16x64xf32, #tpu.memory_space<vmem>>, vector<2x32xf32>,
    %242 = vector.extract_strided_slice %239 {offsets = [0, 32], sizes = [2, 32], strides = [1, 1]} : vector<2x64xf32> to vector<2x32xf32>
    %c4_50 = arith.constant 4 : index
    %c32_51 = arith.constant 32 : index
    %243 = vector.load %arg10[%c4_50, %c32_51] : memref<16x64xf32, #tpu.memory_space<vmem>>, vector<2x32xf32>
    tpu.vector_store %arg10[%c4_50, %c32_51], %242 {strides = array<i32>} : memref<16x64xf32, #tpu.memory_space<vmem>>, vector<2x32xf32>,
    %244 = vector.extract_strided_slice %24 {offsets = [12, 0], sizes = [2, 256], strides = [1, 1]} : vector<16x256xf32> to vector<2x256xf32>
    %245 = vector.extract_strided_slice %24 {offsets = [2, 0], sizes = [2, 256], strides = [1, 1]} : vector<16x256xf32> to vector<2x256xf32>
    %246 = vector.shape_cast %18 : vector<1x256xi1> to vector<1x256xi1>
    %247 = vector.broadcast %246 : vector<1x256xi1> to vector<2x256xi1>
    %248 = arith.select %247, %244, %245 : vector<2x256xi1>, vector<2x256xf32>
    %cst_52 = arith.constant dense<0.000000e+00> : vector<2x256xf32>
    %249 = tpu.matmul %239, %25, %cst_52 {dimension_numbers = #tpu.dot_dimension_numbers<[1], [0], [0], [1], [0, 0, 1, 1], [], []>} : vector<2x64xf32>, vector<64x256xf32>, vector<2x256xf32> -> vector<2x256xf32>
    %250 = arith.addf %248, %249 : vector<2x256xf32>
    %251 = vector.extract_strided_slice %250 {offsets = [0, 0], sizes = [2, 64], strides = [1, 1]} : vector<2x256xf32> to vector<2x64xf32>
    %252 = arith.negf %251 : vector<2x64xf32>
    %253 = math.exp %252 : vector<2x64xf32>
    %cst_53 = arith.constant 1.000000e+00 : f32
    %254 = vector.broadcast %cst_53 : f32 to vector<2x64xf32>
    %255 = arith.addf %254, %253 : vector<2x64xf32>
    %256 = arith.divf %254, %255 : vector<2x64xf32>
    %257 = vector.extract_strided_slice %250 {offsets = [0, 64], sizes = [2, 64], strides = [1, 1]} : vector<2x256xf32> to vector<2x64xf32>
    %258 = arith.negf %257 : vector<2x64xf32>
    %259 = math.exp %258 : vector<2x64xf32>
    %cst_54 = arith.constant 1.000000e+00 : f32
    %260 = vector.broadcast %cst_54 : f32 to vector<2x64xf32>
    %261 = arith.addf %260, %259 : vector<2x64xf32>
    %262 = arith.divf %260, %261 : vector<2x64xf32>
    %263 = vector.extract_strided_slice %250 {offsets = [0, 128], sizes = [2, 64], strides = [1, 1]} : vector<2x256xf32> to vector<2x64xf32>
    %264 = math.tanh %263 : vector<2x64xf32>
    %265 = vector.extract_strided_slice %250 {offsets = [0, 192], sizes = [2, 64], strides = [1, 1]} : vector<2x256xf32> to vector<2x64xf32>
    %266 = arith.negf %265 : vector<2x64xf32>
    %267 = math.exp %266 : vector<2x64xf32>
    %cst_55 = arith.constant 1.000000e+00 : f32
    %268 = vector.broadcast %cst_55 : f32 to vector<2x64xf32>
    %269 = arith.addf %268, %267 : vector<2x64xf32>
    %270 = arith.divf %268, %269 : vector<2x64xf32>
    %271 = arith.mulf %262, %237 : vector<2x64xf32>
    %272 = arith.mulf %256, %264 : vector<2x64xf32>
    %273 = arith.addf %271, %272 : vector<2x64xf32>
    %274 = math.tanh %273 : vector<2x64xf32>
    %275 = arith.mulf %270, %274 : vector<2x64xf32>
    %276 = vector.extract_strided_slice %275 {offsets = [0, 0], sizes = [2, 32], strides = [1, 1]} : vector<2x64xf32> to vector<2x32xf32>
    %c12_56 = arith.constant 12 : index
    %c0_57 = arith.constant 0 : index
    %277 = vector.load %arg10[%c12_56, %c0_57] : memref<16x64xf32, #tpu.memory_space<vmem>>, vector<2x32xf32>
    tpu.vector_store %arg10[%c12_56, %c0_57], %276 {strides = array<i32>} : memref<16x64xf32, #tpu.memory_space<vmem>>, vector<2x32xf32>,
    %278 = vector.extract_strided_slice %275 {offsets = [0, 32], sizes = [2, 32], strides = [1, 1]} : vector<2x64xf32> to vector<2x32xf32>
    %c2_58 = arith.constant 2 : index
    %c32_59 = arith.constant 32 : index
    %279 = vector.load %arg10[%c2_58, %c32_59] : memref<16x64xf32, #tpu.memory_space<vmem>>, vector<2x32xf32>
    tpu.vector_store %arg10[%c2_58, %c32_59], %278 {strides = array<i32>} : memref<16x64xf32, #tpu.memory_space<vmem>>, vector<2x32xf32>,
    %280 = vector.extract_strided_slice %24 {offsets = [14, 0], sizes = [2, 256], strides = [1, 1]} : vector<16x256xf32> to vector<2x256xf32>
    %281 = vector.extract_strided_slice %24 {offsets = [0, 0], sizes = [2, 256], strides = [1, 1]} : vector<16x256xf32> to vector<2x256xf32>
    %282 = vector.shape_cast %18 : vector<1x256xi1> to vector<1x256xi1>
    %283 = vector.broadcast %282 : vector<1x256xi1> to vector<2x256xi1>
    %284 = arith.select %283, %280, %281 : vector<2x256xi1>, vector<2x256xf32>
    %cst_60 = arith.constant dense<0.000000e+00> : vector<2x256xf32>
    %285 = tpu.matmul %275, %25, %cst_60 {dimension_numbers = #tpu.dot_dimension_numbers<[1], [0], [0], [1], [0, 0, 1, 1], [], []>} : vector<2x64xf32>, vector<64x256xf32>, vector<2x256xf32> -> vector<2x256xf32>
    %286 = arith.addf %284, %285 : vector<2x256xf32>
    %287 = vector.extract_strided_slice %286 {offsets = [0, 0], sizes = [2, 64], strides = [1, 1]} : vector<2x256xf32> to vector<2x64xf32>
    %288 = arith.negf %287 : vector<2x64xf32>
    %289 = math.exp %288 : vector<2x64xf32>
    %cst_61 = arith.constant 1.000000e+00 : f32
    %290 = vector.broadcast %cst_61 : f32 to vector<2x64xf32>
    %291 = arith.addf %290, %289 : vector<2x64xf32>
    %292 = arith.divf %290, %291 : vector<2x64xf32>
    %293 = vector.extract_strided_slice %286 {offsets = [0, 64], sizes = [2, 64], strides = [1, 1]} : vector<2x256xf32> to vector<2x64xf32>
    %294 = arith.negf %293 : vector<2x64xf32>
    %295 = math.exp %294 : vector<2x64xf32>
    %cst_62 = arith.constant 1.000000e+00 : f32
    %296 = vector.broadcast %cst_62 : f32 to vector<2x64xf32>
    %297 = arith.addf %296, %295 : vector<2x64xf32>
    %298 = arith.divf %296, %297 : vector<2x64xf32>
    %299 = vector.extract_strided_slice %286 {offsets = [0, 128], sizes = [2, 64], strides = [1, 1]} : vector<2x256xf32> to vector<2x64xf32>
    %300 = math.tanh %299 : vector<2x64xf32>
    %301 = vector.extract_strided_slice %286 {offsets = [0, 192], sizes = [2, 64], strides = [1, 1]} : vector<2x256xf32> to vector<2x64xf32>
    %302 = arith.negf %301 : vector<2x64xf32>
    %303 = math.exp %302 : vector<2x64xf32>
    %cst_63 = arith.constant 1.000000e+00 : f32
    %304 = vector.broadcast %cst_63 : f32 to vector<2x64xf32>
    %305 = arith.addf %304, %303 : vector<2x64xf32>
    %306 = arith.divf %304, %305 : vector<2x64xf32>
    %307 = arith.mulf %298, %273 : vector<2x64xf32>
    %308 = arith.mulf %292, %300 : vector<2x64xf32>
    %309 = arith.addf %307, %308 : vector<2x64xf32>
    %310 = math.tanh %309 : vector<2x64xf32>
    %311 = arith.mulf %306, %310 : vector<2x64xf32>
    %312 = vector.extract_strided_slice %311 {offsets = [0, 0], sizes = [2, 32], strides = [1, 1]} : vector<2x64xf32> to vector<2x32xf32>
    %c14_64 = arith.constant 14 : index
    %c0_65 = arith.constant 0 : index
    %313 = vector.load %arg10[%c14_64, %c0_65] : memref<16x64xf32, #tpu.memory_space<vmem>>, vector<2x32xf32>
    tpu.vector_store %arg10[%c14_64, %c0_65], %312 {strides = array<i32>} : memref<16x64xf32, #tpu.memory_space<vmem>>, vector<2x32xf32>,
    %314 = vector.extract_strided_slice %311 {offsets = [0, 32], sizes = [2, 32], strides = [1, 1]} : vector<2x64xf32> to vector<2x32xf32>
    %c0_66 = arith.constant 0 : index
    %c32_67 = arith.constant 32 : index
    %315 = vector.load %arg10[%c0_66, %c32_67] : memref<16x64xf32, #tpu.memory_space<vmem>>, vector<2x32xf32>
    tpu.vector_store %arg10[%c0_66, %c32_67], %314 {strides = array<i32>} : memref<16x64xf32, #tpu.memory_space<vmem>>, vector<2x32xf32>,
    %c0_68 = arith.constant 0 : index
    %c0_69 = arith.constant 0 : index
    %316 = vector.load %arg10[%c0_68, %c0_69] : memref<16x64xf32, #tpu.memory_space<vmem>>, vector<16x64xf32>
    %c0_70 = arith.constant 0 : index
    %c0_71 = arith.constant 0 : index
    %317 = vector.load %arg4[%c0_70, %c0_71] : memref<64x256xf32, #tpu.memory_space<vmem>>, vector<64x256xf32>
    %cst_72 = arith.constant dense<0.000000e+00> : vector<16x256xf32>
    %318 = tpu.matmul %316, %317, %cst_72 {dimension_numbers = #tpu.dot_dimension_numbers<[1], [0], [0], [1], [0, 0, 1, 1], [], []>} : vector<16x64xf32>, vector<64x256xf32>, vector<16x256xf32> -> vector<16x256xf32>
    %c0_73 = arith.constant 0 : index
    %c0_74 = arith.constant 0 : index
    %319 = vector.load %arg6[%c0_73, %c0_74] : memref<1x256xf32, #tpu.memory_space<vmem>>, vector<1x256xf32>
    %320 = vector.broadcast %319 : vector<1x256xf32> to vector<16x256xf32>
    %321 = arith.addf %318, %320 : vector<16x256xf32>
    %c0_75 = arith.constant 0 : index
    %c0_76 = arith.constant 0 : index
    %322 = vector.load %arg5[%c0_75, %c0_76] : memref<64x256xf32, #tpu.memory_space<vmem>>, vector<64x256xf32>
    %cst_77 = arith.constant 0.000000e+00 : f32
    %323 = vector.broadcast %cst_77 : f32 to vector<2x64xf32>
    %cst_78 = arith.constant 0.000000e+00 : f32
    %324 = vector.broadcast %cst_78 : f32 to vector<2x64xf32>
    %325 = vector.extract_strided_slice %321 {offsets = [0, 0], sizes = [2, 256], strides = [1, 1]} : vector<16x256xf32> to vector<2x256xf32>
    %326 = vector.extract_strided_slice %321 {offsets = [14, 0], sizes = [2, 256], strides = [1, 1]} : vector<16x256xf32> to vector<2x256xf32>
    %327 = vector.shape_cast %18 : vector<1x256xi1> to vector<1x256xi1>
    %328 = vector.broadcast %327 : vector<1x256xi1> to vector<2x256xi1>
    %329 = arith.select %328, %325, %326 : vector<2x256xi1>, vector<2x256xf32>
    %cst_79 = arith.constant dense<0.000000e+00> : vector<2x256xf32>
    %330 = tpu.matmul %323, %322, %cst_79 {dimension_numbers = #tpu.dot_dimension_numbers<[1], [0], [0], [1], [0, 0, 1, 1], [], []>} : vector<2x64xf32>, vector<64x256xf32>, vector<2x256xf32> -> vector<2x256xf32>
    %331 = arith.addf %329, %330 : vector<2x256xf32>
    %332 = vector.extract_strided_slice %331 {offsets = [0, 0], sizes = [2, 64], strides = [1, 1]} : vector<2x256xf32> to vector<2x64xf32>
    %333 = arith.negf %332 : vector<2x64xf32>
    %334 = math.exp %333 : vector<2x64xf32>
    %cst_80 = arith.constant 1.000000e+00 : f32
    %335 = vector.broadcast %cst_80 : f32 to vector<2x64xf32>
    %336 = arith.addf %335, %334 : vector<2x64xf32>
    %337 = arith.divf %335, %336 : vector<2x64xf32>
    %338 = vector.extract_strided_slice %331 {offsets = [0, 64], sizes = [2, 64], strides = [1, 1]} : vector<2x256xf32> to vector<2x64xf32>
    %339 = arith.negf %338 : vector<2x64xf32>
    %340 = math.exp %339 : vector<2x64xf32>
    %cst_81 = arith.constant 1.000000e+00 : f32
    %341 = vector.broadcast %cst_81 : f32 to vector<2x64xf32>
    %342 = arith.addf %341, %340 : vector<2x64xf32>
    %343 = arith.divf %341, %342 : vector<2x64xf32>
    %344 = vector.extract_strided_slice %331 {offsets = [0, 128], sizes = [2, 64], strides = [1, 1]} : vector<2x256xf32> to vector<2x64xf32>
    %345 = math.tanh %344 : vector<2x64xf32>
    %346 = vector.extract_strided_slice %331 {offsets = [0, 192], sizes = [2, 64], strides = [1, 1]} : vector<2x256xf32> to vector<2x64xf32>
    %347 = arith.negf %346 : vector<2x64xf32>
    %348 = math.exp %347 : vector<2x64xf32>
    %cst_82 = arith.constant 1.000000e+00 : f32
    %349 = vector.broadcast %cst_82 : f32 to vector<2x64xf32>
    %350 = arith.addf %349, %348 : vector<2x64xf32>
    %351 = arith.divf %349, %350 : vector<2x64xf32>
    %352 = arith.mulf %343, %324 : vector<2x64xf32>
    %353 = arith.mulf %337, %345 : vector<2x64xf32>
    %354 = arith.addf %352, %353 : vector<2x64xf32>
    %355 = math.tanh %354 : vector<2x64xf32>
    %356 = arith.mulf %351, %355 : vector<2x64xf32>
    %357 = vector.extract_strided_slice %321 {offsets = [2, 0], sizes = [2, 256], strides = [1, 1]} : vector<16x256xf32> to vector<2x256xf32>
    %358 = vector.extract_strided_slice %321 {offsets = [12, 0], sizes = [2, 256], strides = [1, 1]} : vector<16x256xf32> to vector<2x256xf32>
    %359 = vector.shape_cast %18 : vector<1x256xi1> to vector<1x256xi1>
    %360 = vector.broadcast %359 : vector<1x256xi1> to vector<2x256xi1>
    %361 = arith.select %360, %357, %358 : vector<2x256xi1>, vector<2x256xf32>
    %cst_83 = arith.constant dense<0.000000e+00> : vector<2x256xf32>
    %362 = tpu.matmul %356, %322, %cst_83 {dimension_numbers = #tpu.dot_dimension_numbers<[1], [0], [0], [1], [0, 0, 1, 1], [], []>} : vector<2x64xf32>, vector<64x256xf32>, vector<2x256xf32> -> vector<2x256xf32>
    %363 = arith.addf %361, %362 : vector<2x256xf32>
    %364 = vector.extract_strided_slice %363 {offsets = [0, 0], sizes = [2, 64], strides = [1, 1]} : vector<2x256xf32> to vector<2x64xf32>
    %365 = arith.negf %364 : vector<2x64xf32>
    %366 = math.exp %365 : vector<2x64xf32>
    %cst_84 = arith.constant 1.000000e+00 : f32
    %367 = vector.broadcast %cst_84 : f32 to vector<2x64xf32>
    %368 = arith.addf %367, %366 : vector<2x64xf32>
    %369 = arith.divf %367, %368 : vector<2x64xf32>
    %370 = vector.extract_strided_slice %363 {offsets = [0, 64], sizes = [2, 64], strides = [1, 1]} : vector<2x256xf32> to vector<2x64xf32>
    %371 = arith.negf %370 : vector<2x64xf32>
    %372 = math.exp %371 : vector<2x64xf32>
    %cst_85 = arith.constant 1.000000e+00 : f32
    %373 = vector.broadcast %cst_85 : f32 to vector<2x64xf32>
    %374 = arith.addf %373, %372 : vector<2x64xf32>
    %375 = arith.divf %373, %374 : vector<2x64xf32>
    %376 = vector.extract_strided_slice %363 {offsets = [0, 128], sizes = [2, 64], strides = [1, 1]} : vector<2x256xf32> to vector<2x64xf32>
    %377 = math.tanh %376 : vector<2x64xf32>
    %378 = vector.extract_strided_slice %363 {offsets = [0, 192], sizes = [2, 64], strides = [1, 1]} : vector<2x256xf32> to vector<2x64xf32>
    %379 = arith.negf %378 : vector<2x64xf32>
    %380 = math.exp %379 : vector<2x64xf32>
    %cst_86 = arith.constant 1.000000e+00 : f32
    %381 = vector.broadcast %cst_86 : f32 to vector<2x64xf32>
    %382 = arith.addf %381, %380 : vector<2x64xf32>
    %383 = arith.divf %381, %382 : vector<2x64xf32>
    %384 = arith.mulf %375, %354 : vector<2x64xf32>
    %385 = arith.mulf %369, %377 : vector<2x64xf32>
    %386 = arith.addf %384, %385 : vector<2x64xf32>
    %387 = math.tanh %386 : vector<2x64xf32>
    %388 = arith.mulf %383, %387 : vector<2x64xf32>
    %389 = vector.extract_strided_slice %321 {offsets = [4, 0], sizes = [2, 256], strides = [1, 1]} : vector<16x256xf32> to vector<2x256xf32>
    %390 = vector.extract_strided_slice %321 {offsets = [10, 0], sizes = [2, 256], strides = [1, 1]} : vector<16x256xf32> to vector<2x256xf32>
    %391 = vector.shape_cast %18 : vector<1x256xi1> to vector<1x256xi1>
    %392 = vector.broadcast %391 : vector<1x256xi1> to vector<2x256xi1>
    %393 = arith.select %392, %389, %390 : vector<2x256xi1>, vector<2x256xf32>
    %cst_87 = arith.constant dense<0.000000e+00> : vector<2x256xf32>
    %394 = tpu.matmul %388, %322, %cst_87 {dimension_numbers = #tpu.dot_dimension_numbers<[1], [0], [0], [1], [0, 0, 1, 1], [], []>} : vector<2x64xf32>, vector<64x256xf32>, vector<2x256xf32> -> vector<2x256xf32>
    %395 = arith.addf %393, %394 : vector<2x256xf32>
    %396 = vector.extract_strided_slice %395 {offsets = [0, 0], sizes = [2, 64], strides = [1, 1]} : vector<2x256xf32> to vector<2x64xf32>
    %397 = arith.negf %396 : vector<2x64xf32>
    %398 = math.exp %397 : vector<2x64xf32>
    %cst_88 = arith.constant 1.000000e+00 : f32
    %399 = vector.broadcast %cst_88 : f32 to vector<2x64xf32>
    %400 = arith.addf %399, %398 : vector<2x64xf32>
    %401 = arith.divf %399, %400 : vector<2x64xf32>
    %402 = vector.extract_strided_slice %395 {offsets = [0, 64], sizes = [2, 64], strides = [1, 1]} : vector<2x256xf32> to vector<2x64xf32>
    %403 = arith.negf %402 : vector<2x64xf32>
    %404 = math.exp %403 : vector<2x64xf32>
    %cst_89 = arith.constant 1.000000e+00 : f32
    %405 = vector.broadcast %cst_89 : f32 to vector<2x64xf32>
    %406 = arith.addf %405, %404 : vector<2x64xf32>
    %407 = arith.divf %405, %406 : vector<2x64xf32>
    %408 = vector.extract_strided_slice %395 {offsets = [0, 128], sizes = [2, 64], strides = [1, 1]} : vector<2x256xf32> to vector<2x64xf32>
    %409 = math.tanh %408 : vector<2x64xf32>
    %410 = vector.extract_strided_slice %395 {offsets = [0, 192], sizes = [2, 64], strides = [1, 1]} : vector<2x256xf32> to vector<2x64xf32>
    %411 = arith.negf %410 : vector<2x64xf32>
    %412 = math.exp %411 : vector<2x64xf32>
    %cst_90 = arith.constant 1.000000e+00 : f32
    %413 = vector.broadcast %cst_90 : f32 to vector<2x64xf32>
    %414 = arith.addf %413, %412 : vector<2x64xf32>
    %415 = arith.divf %413, %414 : vector<2x64xf32>
    %416 = arith.mulf %407, %386 : vector<2x64xf32>
    %417 = arith.mulf %401, %409 : vector<2x64xf32>
    %418 = arith.addf %416, %417 : vector<2x64xf32>
    %419 = math.tanh %418 : vector<2x64xf32>
    %420 = arith.mulf %415, %419 : vector<2x64xf32>
    %421 = vector.extract_strided_slice %321 {offsets = [6, 0], sizes = [2, 256], strides = [1, 1]} : vector<16x256xf32> to vector<2x256xf32>
    %422 = vector.extract_strided_slice %321 {offsets = [8, 0], sizes = [2, 256], strides = [1, 1]} : vector<16x256xf32> to vector<2x256xf32>
    %423 = vector.shape_cast %18 : vector<1x256xi1> to vector<1x256xi1>
    %424 = vector.broadcast %423 : vector<1x256xi1> to vector<2x256xi1>
    %425 = arith.select %424, %421, %422 : vector<2x256xi1>, vector<2x256xf32>
    %cst_91 = arith.constant dense<0.000000e+00> : vector<2x256xf32>
    %426 = tpu.matmul %420, %322, %cst_91 {dimension_numbers = #tpu.dot_dimension_numbers<[1], [0], [0], [1], [0, 0, 1, 1], [], []>} : vector<2x64xf32>, vector<64x256xf32>, vector<2x256xf32> -> vector<2x256xf32>
    %427 = arith.addf %425, %426 : vector<2x256xf32>
    %428 = vector.extract_strided_slice %427 {offsets = [0, 0], sizes = [2, 64], strides = [1, 1]} : vector<2x256xf32> to vector<2x64xf32>
    %429 = arith.negf %428 : vector<2x64xf32>
    %430 = math.exp %429 : vector<2x64xf32>
    %cst_92 = arith.constant 1.000000e+00 : f32
    %431 = vector.broadcast %cst_92 : f32 to vector<2x64xf32>
    %432 = arith.addf %431, %430 : vector<2x64xf32>
    %433 = arith.divf %431, %432 : vector<2x64xf32>
    %434 = vector.extract_strided_slice %427 {offsets = [0, 64], sizes = [2, 64], strides = [1, 1]} : vector<2x256xf32> to vector<2x64xf32>
    %435 = arith.negf %434 : vector<2x64xf32>
    %436 = math.exp %435 : vector<2x64xf32>
    %cst_93 = arith.constant 1.000000e+00 : f32
    %437 = vector.broadcast %cst_93 : f32 to vector<2x64xf32>
    %438 = arith.addf %437, %436 : vector<2x64xf32>
    %439 = arith.divf %437, %438 : vector<2x64xf32>
    %440 = vector.extract_strided_slice %427 {offsets = [0, 128], sizes = [2, 64], strides = [1, 1]} : vector<2x256xf32> to vector<2x64xf32>
    %441 = math.tanh %440 : vector<2x64xf32>
    %442 = vector.extract_strided_slice %427 {offsets = [0, 192], sizes = [2, 64], strides = [1, 1]} : vector<2x256xf32> to vector<2x64xf32>
    %443 = arith.negf %442 : vector<2x64xf32>
    %444 = math.exp %443 : vector<2x64xf32>
    %cst_94 = arith.constant 1.000000e+00 : f32
    %445 = vector.broadcast %cst_94 : f32 to vector<2x64xf32>
    %446 = arith.addf %445, %444 : vector<2x64xf32>
    %447 = arith.divf %445, %446 : vector<2x64xf32>
    %448 = arith.mulf %439, %418 : vector<2x64xf32>
    %449 = arith.mulf %433, %441 : vector<2x64xf32>
    %450 = arith.addf %448, %449 : vector<2x64xf32>
    %451 = math.tanh %450 : vector<2x64xf32>
    %452 = arith.mulf %447, %451 : vector<2x64xf32>
    %453 = vector.extract_strided_slice %321 {offsets = [8, 0], sizes = [2, 256], strides = [1, 1]} : vector<16x256xf32> to vector<2x256xf32>
    %454 = vector.extract_strided_slice %321 {offsets = [6, 0], sizes = [2, 256], strides = [1, 1]} : vector<16x256xf32> to vector<2x256xf32>
    %455 = vector.shape_cast %18 : vector<1x256xi1> to vector<1x256xi1>
    %456 = vector.broadcast %455 : vector<1x256xi1> to vector<2x256xi1>
    %457 = arith.select %456, %453, %454 : vector<2x256xi1>, vector<2x256xf32>
    %cst_95 = arith.constant dense<0.000000e+00> : vector<2x256xf32>
    %458 = tpu.matmul %452, %322, %cst_95 {dimension_numbers = #tpu.dot_dimension_numbers<[1], [0], [0], [1], [0, 0, 1, 1], [], []>} : vector<2x64xf32>, vector<64x256xf32>, vector<2x256xf32> -> vector<2x256xf32>
    %459 = arith.addf %457, %458 : vector<2x256xf32>
    %460 = vector.extract_strided_slice %459 {offsets = [0, 0], sizes = [2, 64], strides = [1, 1]} : vector<2x256xf32> to vector<2x64xf32>
    %461 = arith.negf %460 : vector<2x64xf32>
    %462 = math.exp %461 : vector<2x64xf32>
    %cst_96 = arith.constant 1.000000e+00 : f32
    %463 = vector.broadcast %cst_96 : f32 to vector<2x64xf32>
    %464 = arith.addf %463, %462 : vector<2x64xf32>
    %465 = arith.divf %463, %464 : vector<2x64xf32>
    %466 = vector.extract_strided_slice %459 {offsets = [0, 64], sizes = [2, 64], strides = [1, 1]} : vector<2x256xf32> to vector<2x64xf32>
    %467 = arith.negf %466 : vector<2x64xf32>
    %468 = math.exp %467 : vector<2x64xf32>
    %cst_97 = arith.constant 1.000000e+00 : f32
    %469 = vector.broadcast %cst_97 : f32 to vector<2x64xf32>
    %470 = arith.addf %469, %468 : vector<2x64xf32>
    %471 = arith.divf %469, %470 : vector<2x64xf32>
    %472 = vector.extract_strided_slice %459 {offsets = [0, 128], sizes = [2, 64], strides = [1, 1]} : vector<2x256xf32> to vector<2x64xf32>
    %473 = math.tanh %472 : vector<2x64xf32>
    %474 = vector.extract_strided_slice %459 {offsets = [0, 192], sizes = [2, 64], strides = [1, 1]} : vector<2x256xf32> to vector<2x64xf32>
    %475 = arith.negf %474 : vector<2x64xf32>
    %476 = math.exp %475 : vector<2x64xf32>
    %cst_98 = arith.constant 1.000000e+00 : f32
    %477 = vector.broadcast %cst_98 : f32 to vector<2x64xf32>
    %478 = arith.addf %477, %476 : vector<2x64xf32>
    %479 = arith.divf %477, %478 : vector<2x64xf32>
    %480 = arith.mulf %471, %450 : vector<2x64xf32>
    %481 = arith.mulf %465, %473 : vector<2x64xf32>
    %482 = arith.addf %480, %481 : vector<2x64xf32>
    %483 = math.tanh %482 : vector<2x64xf32>
    %484 = arith.mulf %479, %483 : vector<2x64xf32>
    %485 = vector.extract_strided_slice %321 {offsets = [10, 0], sizes = [2, 256], strides = [1, 1]} : vector<16x256xf32> to vector<2x256xf32>
    %486 = vector.extract_strided_slice %321 {offsets = [4, 0], sizes = [2, 256], strides = [1, 1]} : vector<16x256xf32> to vector<2x256xf32>
    %487 = vector.shape_cast %18 : vector<1x256xi1> to vector<1x256xi1>
    %488 = vector.broadcast %487 : vector<1x256xi1> to vector<2x256xi1>
    %489 = arith.select %488, %485, %486 : vector<2x256xi1>, vector<2x256xf32>
    %cst_99 = arith.constant dense<0.000000e+00> : vector<2x256xf32>
    %490 = tpu.matmul %484, %322, %cst_99 {dimension_numbers = #tpu.dot_dimension_numbers<[1], [0], [0], [1], [0, 0, 1, 1], [], []>} : vector<2x64xf32>, vector<64x256xf32>, vector<2x256xf32> -> vector<2x256xf32>
    %491 = arith.addf %489, %490 : vector<2x256xf32>
    %492 = vector.extract_strided_slice %491 {offsets = [0, 0], sizes = [2, 64], strides = [1, 1]} : vector<2x256xf32> to vector<2x64xf32>
    %493 = arith.negf %492 : vector<2x64xf32>
    %494 = math.exp %493 : vector<2x64xf32>
    %cst_100 = arith.constant 1.000000e+00 : f32
    %495 = vector.broadcast %cst_100 : f32 to vector<2x64xf32>
    %496 = arith.addf %495, %494 : vector<2x64xf32>
    %497 = arith.divf %495, %496 : vector<2x64xf32>
    %498 = vector.extract_strided_slice %491 {offsets = [0, 64], sizes = [2, 64], strides = [1, 1]} : vector<2x256xf32> to vector<2x64xf32>
    %499 = arith.negf %498 : vector<2x64xf32>
    %500 = math.exp %499 : vector<2x64xf32>
    %cst_101 = arith.constant 1.000000e+00 : f32
    %501 = vector.broadcast %cst_101 : f32 to vector<2x64xf32>
    %502 = arith.addf %501, %500 : vector<2x64xf32>
    %503 = arith.divf %501, %502 : vector<2x64xf32>
    %504 = vector.extract_strided_slice %491 {offsets = [0, 128], sizes = [2, 64], strides = [1, 1]} : vector<2x256xf32> to vector<2x64xf32>
    %505 = math.tanh %504 : vector<2x64xf32>
    %506 = vector.extract_strided_slice %491 {offsets = [0, 192], sizes = [2, 64], strides = [1, 1]} : vector<2x256xf32> to vector<2x64xf32>
    %507 = arith.negf %506 : vector<2x64xf32>
    %508 = math.exp %507 : vector<2x64xf32>
    %cst_102 = arith.constant 1.000000e+00 : f32
    %509 = vector.broadcast %cst_102 : f32 to vector<2x64xf32>
    %510 = arith.addf %509, %508 : vector<2x64xf32>
    %511 = arith.divf %509, %510 : vector<2x64xf32>
    %512 = arith.mulf %503, %482 : vector<2x64xf32>
    %513 = arith.mulf %497, %505 : vector<2x64xf32>
    %514 = arith.addf %512, %513 : vector<2x64xf32>
    %515 = math.tanh %514 : vector<2x64xf32>
    %516 = arith.mulf %511, %515 : vector<2x64xf32>
    %517 = vector.extract_strided_slice %321 {offsets = [12, 0], sizes = [2, 256], strides = [1, 1]} : vector<16x256xf32> to vector<2x256xf32>
    %518 = vector.extract_strided_slice %321 {offsets = [2, 0], sizes = [2, 256], strides = [1, 1]} : vector<16x256xf32> to vector<2x256xf32>
    %519 = vector.shape_cast %18 : vector<1x256xi1> to vector<1x256xi1>
    %520 = vector.broadcast %519 : vector<1x256xi1> to vector<2x256xi1>
    %521 = arith.select %520, %517, %518 : vector<2x256xi1>, vector<2x256xf32>
    %cst_103 = arith.constant dense<0.000000e+00> : vector<2x256xf32>
    %522 = tpu.matmul %516, %322, %cst_103 {dimension_numbers = #tpu.dot_dimension_numbers<[1], [0], [0], [1], [0, 0, 1, 1], [], []>} : vector<2x64xf32>, vector<64x256xf32>, vector<2x256xf32> -> vector<2x256xf32>
    %523 = arith.addf %521, %522 : vector<2x256xf32>
    %524 = vector.extract_strided_slice %523 {offsets = [0, 0], sizes = [2, 64], strides = [1, 1]} : vector<2x256xf32> to vector<2x64xf32>
    %525 = arith.negf %524 : vector<2x64xf32>
    %526 = math.exp %525 : vector<2x64xf32>
    %cst_104 = arith.constant 1.000000e+00 : f32
    %527 = vector.broadcast %cst_104 : f32 to vector<2x64xf32>
    %528 = arith.addf %527, %526 : vector<2x64xf32>
    %529 = arith.divf %527, %528 : vector<2x64xf32>
    %530 = vector.extract_strided_slice %523 {offsets = [0, 64], sizes = [2, 64], strides = [1, 1]} : vector<2x256xf32> to vector<2x64xf32>
    %531 = arith.negf %530 : vector<2x64xf32>
    %532 = math.exp %531 : vector<2x64xf32>
    %cst_105 = arith.constant 1.000000e+00 : f32
    %533 = vector.broadcast %cst_105 : f32 to vector<2x64xf32>
    %534 = arith.addf %533, %532 : vector<2x64xf32>
    %535 = arith.divf %533, %534 : vector<2x64xf32>
    %536 = vector.extract_strided_slice %523 {offsets = [0, 128], sizes = [2, 64], strides = [1, 1]} : vector<2x256xf32> to vector<2x64xf32>
    %537 = math.tanh %536 : vector<2x64xf32>
    %538 = vector.extract_strided_slice %523 {offsets = [0, 192], sizes = [2, 64], strides = [1, 1]} : vector<2x256xf32> to vector<2x64xf32>
    %539 = arith.negf %538 : vector<2x64xf32>
    %540 = math.exp %539 : vector<2x64xf32>
    %cst_106 = arith.constant 1.000000e+00 : f32
    %541 = vector.broadcast %cst_106 : f32 to vector<2x64xf32>
    %542 = arith.addf %541, %540 : vector<2x64xf32>
    %543 = arith.divf %541, %542 : vector<2x64xf32>
    %544 = arith.mulf %535, %514 : vector<2x64xf32>
    %545 = arith.mulf %529, %537 : vector<2x64xf32>
    %546 = arith.addf %544, %545 : vector<2x64xf32>
    %547 = math.tanh %546 : vector<2x64xf32>
    %548 = arith.mulf %543, %547 : vector<2x64xf32>
    %549 = vector.extract_strided_slice %321 {offsets = [14, 0], sizes = [2, 256], strides = [1, 1]} : vector<16x256xf32> to vector<2x256xf32>
    %550 = vector.extract_strided_slice %321 {offsets = [0, 0], sizes = [2, 256], strides = [1, 1]} : vector<16x256xf32> to vector<2x256xf32>
    %551 = vector.shape_cast %18 : vector<1x256xi1> to vector<1x256xi1>
    %552 = vector.broadcast %551 : vector<1x256xi1> to vector<2x256xi1>
    %553 = arith.select %552, %549, %550 : vector<2x256xi1>, vector<2x256xf32>
    %cst_107 = arith.constant dense<0.000000e+00> : vector<2x256xf32>
    %554 = tpu.matmul %548, %322, %cst_107 {dimension_numbers = #tpu.dot_dimension_numbers<[1], [0], [0], [1], [0, 0, 1, 1], [], []>} : vector<2x64xf32>, vector<64x256xf32>, vector<2x256xf32> -> vector<2x256xf32>
    %555 = arith.addf %553, %554 : vector<2x256xf32>
    %556 = vector.extract_strided_slice %555 {offsets = [0, 0], sizes = [2, 64], strides = [1, 1]} : vector<2x256xf32> to vector<2x64xf32>
    %557 = arith.negf %556 : vector<2x64xf32>
    %558 = math.exp %557 : vector<2x64xf32>
    %cst_108 = arith.constant 1.000000e+00 : f32
    %559 = vector.broadcast %cst_108 : f32 to vector<2x64xf32>
    %560 = arith.addf %559, %558 : vector<2x64xf32>
    %561 = arith.divf %559, %560 : vector<2x64xf32>
    %562 = vector.extract_strided_slice %555 {offsets = [0, 64], sizes = [2, 64], strides = [1, 1]} : vector<2x256xf32> to vector<2x64xf32>
    %563 = arith.negf %562 : vector<2x64xf32>
    %564 = math.exp %563 : vector<2x64xf32>
    %cst_109 = arith.constant 1.000000e+00 : f32
    %565 = vector.broadcast %cst_109 : f32 to vector<2x64xf32>
    %566 = arith.addf %565, %564 : vector<2x64xf32>
    %567 = arith.divf %565, %566 : vector<2x64xf32>
    %568 = vector.extract_strided_slice %555 {offsets = [0, 128], sizes = [2, 64], strides = [1, 1]} : vector<2x256xf32> to vector<2x64xf32>
    %569 = math.tanh %568 : vector<2x64xf32>
    %570 = vector.extract_strided_slice %555 {offsets = [0, 192], sizes = [2, 64], strides = [1, 1]} : vector<2x256xf32> to vector<2x64xf32>
    %571 = arith.negf %570 : vector<2x64xf32>
    %572 = math.exp %571 : vector<2x64xf32>
    %cst_110 = arith.constant 1.000000e+00 : f32
    %573 = vector.broadcast %cst_110 : f32 to vector<2x64xf32>
    %574 = arith.addf %573, %572 : vector<2x64xf32>
    %575 = arith.divf %573, %574 : vector<2x64xf32>
    %576 = arith.mulf %567, %546 : vector<2x64xf32>
    %577 = arith.mulf %561, %569 : vector<2x64xf32>
    %578 = arith.addf %576, %577 : vector<2x64xf32>
    %579 = math.tanh %578 : vector<2x64xf32>
    %580 = arith.mulf %575, %579 : vector<2x64xf32>
    %c0_111 = arith.constant 0 : index
    %c0_112 = arith.constant 0 : index
    %581 = vector.load %arg7[%c0_111, %c0_112] : memref<64x8xf32, #tpu.memory_space<vmem>>, vector<64x8xf32>
    %cst_113 = arith.constant dense<0.000000e+00> : vector<2x8xf32>
    %582 = tpu.matmul %580, %581, %cst_113 {dimension_numbers = #tpu.dot_dimension_numbers<[1], [0], [0], [1], [0, 0, 1, 1], [], []>} : vector<2x64xf32>, vector<64x8xf32>, vector<2x8xf32> -> vector<2x8xf32>
    %c0_114 = arith.constant 0 : index
    %c0_115 = arith.constant 0 : index
    %583 = vector.load %arg8[%c0_114, %c0_115] : memref<1x8xf32, #tpu.memory_space<vmem>>, vector<1x8xf32>
    %584 = vector.broadcast %583 : vector<1x8xf32> to vector<2x8xf32>
    %585 = arith.addf %582, %584 : vector<2x8xf32>
    %c0_116 = arith.constant 0 : index
    %c0_117 = arith.constant 0 : index
    %586 = vector.load %arg9[%c0_116, %c0_117] : memref<2x8xf32, #tpu.memory_space<vmem>>, vector<2x8xf32>
    tpu.vector_store %arg9[%c0_116, %c0_117], %585 {strides = array<i32>} : memref<2x8xf32, #tpu.memory_space<vmem>>, vector<2x8xf32>,
    return
  }
}

</mosaic_0001>

<bundles_post_ra>
// kernel: model_forward.1
= control target key start
LH: loop header
LB: loop body
LE: loop exit
PB: predicated region body
PF: predicated region fallthrough
CT: control target
= control target key end

     0   :  { %v2836_v7 = vmov 0.0   ;;  %vm84_vm0 = vcmask 261120   ;;  %s3502_s0 = inlined_call_operand.vmem [shape: f32[16,32], index: 0, kind: input, shape index: {}]   ;;  %s3503_s1 = inlined_call_operand.vmem [shape: f32[32,256], index: 1, kind: input, shape index: {}]   ;;  %s3504_s2 = inlined_call_operand.vmem [shape: f32[64,256], index: 2, kind: input, shape index: {}]   ;;  %s3505_s3 = inlined_call_operand.vmem [shape: f32[1,256], index: 3, kind: input, shape index: {}]   ;;  %s3506_s4 = inlined_call_operand.vmem [shape: f32[64,256], index: 4, kind: input, shape index: {}]   ;;  %s3507_s5 = inlined_call_operand.vmem [shape: f32[64,256], index: 5, kind: input, shape index: {}]   ;;  %s3508_s6 = inlined_call_operand.vmem [shape: f32[1,256], index: 6, kind: input, shape index: {}]   ;;  %s3509_s7 = inlined_call_operand.vmem [shape: f32[64,8], index: 7, kind: input, shape index: {}]   ;;  %s3510_s8 = inlined_call_operand.vmem [shape: f32[1,8], index: 8, kind: input, shape index: {}]   ;;  %s3511_s9 = inlined_call_operand.hbm [shape: f32[2,8], index: 9, kind: output, shape index: {}]  }
   0x1   :  { %v65_v0 = vld [vmem:[%s3503_s1 + $0x8] sm:$0xff]  ;;  %v67_v1 = vld [vmem:[%s3503_s1 + $0x18] sm:$0xff]  ;;  %v64_v5 = vld [vmem:[%s3503_s1] sm:$0xff]  ;;  %155 = vmatprep.mubr.f32.mxu0 %v2836_v7  ;;  %264 = vmatprep.mubr.f32.mxu1 %v2836_v7 }
   0x2   :  { %v169_v2 = vld [vmem:[%s3504_s2 + $0x8] sm:$0xff]  ;;  %v2323_v3 = vpack.c.bf16 %v67_v1, %v65_v0  ;;  %v171_v4 = vld [vmem:[%s3504_s2 + $0x18] sm:$0xff]  ;;  %v66_v6 = vld [vmem:[%s3503_s1 + $0x10] sm:$0xff] }
   0x3   :  { %v2911_v8 = vpack.c.bf16 %v171_v4, %v169_v2  ;;  %v2325_v9 = vpack.c.bf16 %v66_v6, %v64_v5  ;;  %v168_v10 = vld [vmem:[%s3504_s2] sm:$0xff]  ;;  %v170_v11 = vld [vmem:[%s3504_s2 + $0x10] sm:$0xff]  ;;  %v69_v12 = vld [vmem:[%s3503_s1 + $0x28] sm:$0xff] }
   0x4   :  { %2324 = vmatprep.subr.bf16.mxu0 %v2323_v3  ;;  %v2922_v13 = vpack.c.bf16 %v170_v11, %v168_v10  ;;  %v71_v14 = vld [vmem:[%s3503_s1 + $0x38] sm:$0xff]  ;;  %v173_v15 = vld [vmem:[%s3504_s2 + $0x28] sm:$0xff]  ;;  %v68_v19 = vld [vmem:[%s3503_s1 + $0x20] sm:$0xff] }
   0x5   :  { %v175_v16 = vld [vmem:[%s3504_s2 + $0x38] sm:$0xff]  ;;  %2332 = vmatprep.subr.bf16.mxu1 %v2911_v8  ;;  %2326 = vmatpush1.bf16.msra.mxu0 %v2325_v9  ;;  %v2327_v17 = vpack.c.bf16 %v71_v14, %v69_v12  ;;  %v70_v20 = vld [vmem:[%s3503_s1 + $0x30] sm:$0xff]  ;;  %v172_v21 = vld [vmem:[%s3504_s2 + $0x20] sm:$0xff] }
   0x6   :  { %v2934_v18 = vpack.c.bf16 %v175_v16, %v173_v15  ;;  %2334 = vmatpush1.bf16.msra.mxu1 %v2922_v13  ;;  %v2329_v22 = vpack.c.bf16 %v70_v20, %v68_v19  ;;  %v174_v23 = vld [vmem:[%s3504_s2 + $0x30] sm:$0xff]  ;;  %v177_v24 = vld [vmem:[%s3504_s2 + $0x48] sm:$0xff]  ;;  %v179_v26 = vld [vmem:[%s3504_s2 + $0x58] sm:$0xff] }
   0x7   :  { %2328 = vmatprep.subr.bf16.mxu0 %v2327_v17  ;;  %v2953_v25 = vpack.c.bf16 %v174_v23, %v172_v21  ;;  %v176_v27 = vld [vmem:[%s3504_s2 + $0x40] sm:$0xff]  ;;  %v178_v28 = vld [vmem:[%s3504_s2 + $0x50] sm:$0xff]  ;;  %v2964_v29 = vpack.c.bf16 %v179_v26, %v177_v24  ;;  %v181_v30 = vld [vmem:[%s3504_s2 + $0x68] sm:$0xff] }
   0x8   :  { %2336 = vmatprep.subr.bf16.mxu1 %v2934_v18  ;;  %v183_v31 = vld [vmem:[%s3504_s2 + $0x78] sm:$0xff]  ;;  %v62_v32 = vld [vmem:[%s3502_s0] sm:$0xff]  ;;  %v2976_v33 = vpack.c.bf16 %v178_v28, %v176_v27 }
   0x9   :  { %2330 = vmatpush1.bf16.msra.mxu0 %v2329_v22 }
   0xa   :  { %2338 = vmatpush1.bf16.msra.mxu1 %v2953_v25  ;;  %2348 = vmatprep.subr.bf16.mxu0 %v2911_v8 }
   0xb   :  { %14 = vsyncpa [#allocation4], 0  ;;  %2340 = vmatprep.subr.bf16.mxu1 %v2964_v29  ;;  %v2980_v34 = vpack.c.bf16 %v183_v31, %v181_v30  ;;  %v180_v35 = vld [vmem:[%s3504_s2 + $0x60] sm:$0xff]  ;;  %v182_v36 = vld [vmem:[%s3504_s2 + $0x70] sm:$0xff]  ;;  %v33_v39 = vlaneseq  ;;  %vm299_vm3 = vcmask 254976   ;;  %vm301_vm4 = vcmask 517376  }
   0xc   :  { %2243 = vmatmul.mubr.msk.f32.vlgmr.msra.gmra.mrb[0].mxu0 %vm84_vm0, %v62_v32  ;;  %v63_v37 = vld [vmem:[%s3502_s0 + $0x8] sm:$0xff]  ;;  %v2995_v38 = vpack.c.bf16 %v182_v36, %v180_v35  ;;  %v72_v43 = vld [vmem:[%s3505_s3] sm:$0x3]  ;;  %s2837_s3 = smov 64   ;;  %vm196_vm5 = vcmask 523264   ;;  %vm419_vm6 = vcmask 257026  }
   0xd   :  { %161 = vmatprep.mubr.f32.mxu0 %v2836_v7  ;;  %2350 = vmatpush1.bf16.msra.mxu0 %v2922_v13  ;;  %v3019_v40 = vshrl.u32 %v33_v39, 7  ;;  %v34_v41 = vand.u32 127, %v33_v39  ;;  %vm421_vm7 = vcmask 519426   ;;  %vm653_vm8 = vcmask 261126   ;;  %s2840_s24 = smov [#allocation3]  }
   0xe   :  { %2342 = vmatpush1.bf16.msra.mxu1 %v2976_v33  ;;  %2352 = vmatprep.subr.bf16.mxu0 %v2934_v18  ;;  %vm655_vm9 = vcmask 523526   ;;  %vm536_vm10 = vcmask 259076   ;;  %vm538_vm11 = vcmask 521476   ;;  %vm2839_vm12 = vmmov 0   ;;  %s2235_s25 = sshll.u32 %s2840_s24, 4  ;;  %s2236_s25 = int_to_ptr.vmem [resolvable:$true] %s2235_s25 }
   0xf   :  { %2344 = vmatprep.subr.bf16.mxu1 %v2980_v34  ;;  %v76_v42 = vsub.s32 0, %v3019_v40  ;;  %v80_v44 = vsub.s32 1, %v3019_v40  ;;  %v35_v45 = vadd.s32 128, %v34_v41  ;;  %v40_v48 = vand.u32 63, %v34_v41  ;;  %s2812_s26 = scalar_lea.vmem %s2236_s25, 32  ;;  %p2817_p1 = scmp.lt.s32.totalorder %s2236_s25, %s2236_s25 }
  0x10   :  { %2244 = vmatmul.mubr.msk.f32.gmra.mrb[2].mxu0 %vm84_vm0, %v63_v37  ;;  %vm2227_vm13 = vcmask 58368   ;;  %p2813_p0 = scmp.ne.s32.totalorder %s2236_s25, %s2812_s26  ;;  %p2818_p2 = scmp.lt.s32.totalorder %s2812_s26, %s2812_s26 }
  0x11   :  { %2354 = vmatpush1.bf16.msra.mxu0 %v2953_v25  ;;  %375 = vmatprep.mubr.f32.mxu0 %v2836_v7  ;;  %v77_v46 = vrot.slane %v72_v43, %v76_v42  ;;  %v81_v47 = vrot.slane %v72_v43, %v80_v44  ;;  %v47_v50 = vand.u32 63, %v35_v45  ;;  %vm3030_vm1 = vcmp.lt.s32.totalorder %v40_v48, 32 }
  0x12   :  { %2346 = vmatpush1.bf16.msra.mxu1 %v2995_v38  ;;  %2356 = vmatprep.subr.bf16.mxu0 %v2964_v29  ;;  %p2819_p3 = por %p2818_p2, %p2817_p1 }
  0x13   :  { %2364 = vmatprep.subr.bf16.mxu1 %v2911_v8  ;;  %vm3034_vm2 = vcmp.lt.s32.totalorder %v47_v50, 32 }
  0x14   :  { %p2820_p4 = pnand %p2819_p3, %p2813_p0 }
  0x15   :  { %265 = vmatmul.mubr.f32.vlgmr.msra.gmra.mrb[0].mxu1 %v2836_v7  ;;  %2358 = vmatpush1.bf16.msra.mxu0 %v2976_v33 }
  0x16   :  { %2360 = vmatprep.subr.bf16.mxu0 %v2980_v34  ;;  %2366 = vmatpush1.bf16.msra.mxu1 %v2922_v13 }
  0x17   :  { %2368 = vmatprep.subr.bf16.mxu1 %v2934_v18  ;;  %492 = vmatprep.mubr.f32.mxu1 %v2836_v7 }
  0x19   :  { %2362 = vmatpush1.bf16.msra.mxu0 %v2995_v38 }
  0x1a   :  { %2370 = vmatpush1.bf16.msra.mxu1 %v2953_v25  ;;  %2380 = vmatprep.subr.bf16.mxu0 %v2911_v8 }
  0x1b   :  { %2372 = vmatprep.subr.bf16.mxu1 %v2964_v29 }
  0x1e   :  { %2374 = vmatpush1.bf16.msra.mxu1 %v2976_v33 }
  0x1f   :  { %2376 = vmatprep.subr.bf16.mxu1 %v2980_v34 }
  0x22   :  { %2378 = vmatpush1.bf16.msra.mxu1 %v2995_v38 }
  0x23   :  { %2396 = vmatprep.subr.bf16.mxu1 %v2911_v8 }
  0xdf   :  { %v157_v49 = vpop.f32.mrb[0].mxu0 }
  0xe0   :  { %v158_v51 = vadd.f32 %v157_v49, %v77_v46  ;;  %v159_v52 = vpop.f32.mrb[1].mxu0 }
  0xe1   :  { %v160_v53 = vadd.f32 %v159_v52, %v81_v47 }
  0xe2   :  { %v659_v59 = vrot.slane %v158_v51, 6  ;;  %v774_v60 = vrot.slane %v158_v51, 2 }
  0xe3   :  { %v163_v55 = vpop.f32.mrb[2].mxu0  ;;  %v660_v62 = vrot.slane %v160_v53, 6  ;;  %v775_v63 = vrot.slane %v160_v53, 2 }
  0xe4   :  { %v164_v57 = vadd.f32 %v163_v55, %v77_v46  ;;  %v165_v58 = vpop.f32.mrb[3].mxu0 }
  0xe5   :  { %v166_v61 = vadd.f32 %v165_v58, %v81_v47 }
  0xe6   :  { %v190_v0 = vrot.slane %v164_v57, 6  ;;  %v303_v1 = vrot.slane %v164_v57, 2  ;;  %v3040_v2 = vsel %vm3030_vm1, %v164_v57, %v659_v59  ;;  %v3044_v3 = vsel %vm3030_vm1, %v164_v57, %v774_v60 }
  0xe7   :  { %v191_v4 = vrot.slane %v166_v61, 6  ;;  %v304_v5 = vrot.slane %v166_v61, 2  ;;  %v3048_v6 = vsel %vm3034_vm2, %v166_v61, %v660_v62  ;;  %v3052_v9 = vsel %vm3034_vm2, %v166_v61, %v775_v63 }
  0xe8   :  { %v3056_v10 = vsel %vm3030_vm1, %v158_v51, %v190_v0  ;;  %v266_v11 = vpop.f32.mrb[0].mxu1  ;;  %v3060_v12 = vsel %vm3030_vm1, %v158_v51, %v303_v1 }
  0xe9   :  { %v271_v14 = vadd.f32 %v266_v11, %v3056_v10  ;;  %v3065_v15 = vsel %vm3034_vm2, %v160_v53, %v191_v4  ;;  %v268_v16 = vpop.f32.mrb[1].mxu1  ;;  %v3069_v17 = vsel %vm3034_vm2, %v160_v53, %v304_v5 }
  0xea   :  { %v272_v20 = vadd.f32 %v268_v16, %v3065_v15 }
  0xeb   :  { %v2245_v19 = vmul.f32 -1.442695, %v271_v14 }
  0xec   :  { %v2246_v27 = vmul.f32 -1.442695, %v272_v20 }
  0xed   :  { %2620 = vpow2.f32 %v2245_v19 }
  0xee   :  { %2622 = vtanh.f32 %v272_v20 }
  0xf7   :  { %v2621_v21 = vpop.eup %2620 }
  0xf8   :  { %v276_v22 = vadd.f32 1.0, %v2621_v21  ;;  %v2623_v23 = vpop.eup %2622 }
  0xfa   :  { %2624 = vrcp.f32 %v276_v22 }
  0xfb   :  { %2626 = vpow2.f32 %v2246_v27 }
 0x104   :  { %v2625_v24 = vpop.eup %2624 }
 0x105   :  { %v287_v26 = vmul.f32 %v2625_v24, %v2623_v23  ;;  %v2627_v28 = vpop.eup %2626  ;;  %v286_v31 = vmul.f32 0.0, %v2625_v24 }
 0x106   :  { %v283_v30 = vadd.f32 1.0, %v2627_v28 }
 0x107   :  { %289 = vrot.lane.b32.xlu0 %v287_v26, %s2837_s3 }
 0x108   :  { %2628 = vrcp.f32 %v283_v30 }
 0x112   :  { %v2629_v36 = vpop.eup %2628 }
 0x179   :  { %v290_v32 = vpop.permute.xlu0 %289 }
 0x17a   :  { %v292_v35 = vadd.f32 %v290_v32, %v286_v31 }
 0x17c   :  { %2630 = vtanh.f32 %v292_v35  ;;  %v404_v55 = vrot.slane %v292_v35, 6 }
 0x186   :  { %v2631_v37 = vpop.eup %2630 }
 0x187   :  { %v294_v39 = vmul.f32 %v2631_v37, %v2629_v36 }
 0x189   :  { %296 = vrot.lane.b32.xlu0 %v294_v39, %s2837_s3 }
 0x1fb   :  { %v297_v41 = vpop.permute.xlu0 %296 }
 0x1fc   :  { %300 = vst.msk [vmem:[#allocation2] sm:$0x3] %vm299_vm3, %v297_v41  ;;  %2247 = vmatmul.mubr.msk.f32.vlgmr.msra.gmra.mrb[4].mxu0 %vm196_vm5, %v297_v41 }
 0x1fd   :  { %302 = vst.msk [vmem:[#allocation2 + $0xe] sm:$0x3] %vm301_vm4, %v297_v41  ;;  %2382 = vmatpush1.bf16.msra.mxu0 %v2922_v13  ;;  %609 = vmatprep.mubr.f32.mxu0 %v2836_v7 }
 0x1fe   :  { %2384 = vmatprep.subr.bf16.mxu0 %v2934_v18 }
 0x201   :  { %2386 = vmatpush1.bf16.msra.mxu0 %v2953_v25 }
 0x202   :  { %2388 = vmatprep.subr.bf16.mxu0 %v2964_v29 }
 0x205   :  { %2390 = vmatpush1.bf16.msra.mxu0 %v2976_v33 }
 0x206   :  { %2392 = vmatprep.subr.bf16.mxu0 %v2980_v34 }
 0x209   :  { %2394 = vmatpush1.bf16.msra.mxu0 %v2995_v38 }
 0x20a   :  { %2412 = vmatprep.subr.bf16.mxu0 %v2911_v8 }
 0x2cf   :  { %v377_v43 = vpop.f32.mrb[4].mxu0 }
 0x2d0   :  { %v384_v45 = vrot.slane %v377_v43, 6  ;;  %v379_v46 = vpop.f32.mrb[5].mxu0 }
 0x2d1   :  { %v385_v49 = vrot.slane %v379_v46, 6 }
 0x2d2   :  { %v388_v47 = vadd.f32 %v384_v45, %v3060_v12 }
 0x2d3   :  { %v389_v50 = vadd.f32 %v385_v49, %v3069_v17 }
 0x2d4   :  { %v2248_v48 = vmul.f32 -1.442695, %v388_v47 }
 0x2d5   :  { %v2249_v60 = vmul.f32 -1.442695, %v389_v50 }
 0x2d6   :  { %2632 = vpow2.f32 %v2248_v48 }
 0x2d7   :  { %2634 = vtanh.f32 %v389_v50 }
 0x2e0   :  { %v2633_v51 = vpop.eup %2632 }
 0x2e1   :  { %v393_v52 = vadd.f32 1.0, %v2633_v51  ;;  %v2635_v53 = vpop.eup %2634 }
 0x2e3   :  { %2636 = vrcp.f32 %v393_v52 }
 0x2e4   :  { %2638 = vpow2.f32 %v2249_v60 }
 0x2ed   :  { %v2637_v57 = vpop.eup %2636 }
 0x2ee   :  { %v407_v58 = vmul.f32 %v2637_v57, %v2635_v53  ;;  %v406_v59 = vmul.f32 %v2637_v57, %v404_v55  ;;  %v2639_v61 = vpop.eup %2638 }
 0x2ef   :  { %v400_v62 = vadd.f32 1.0, %v2639_v61 }
 0x2f0   :  { %409 = vrot.lane.b32.xlu1 %v407_v58, %s2837_s3 }
 0x2f1   :  { %2640 = vrcp.f32 %v400_v62 }
 0x2fb   :  { %v2641_v1 = vpop.eup %2640 }
 0x362   :  { %v410_v63 = vpop.permute.xlu1 %409 }
 0x363   :  { %v412_v0 = vadd.f32 %v410_v63, %v406_v59 }
 0x365   :  { %2642 = vtanh.f32 %v412_v0  ;;  %v521_v30 = vrot.slane %v412_v0, 6 }
 0x36f   :  { %v2643_v4 = vpop.eup %2642 }
 0x370   :  { %v3089_v5 = vmul.f32 %v2643_v4, %v2641_v1 }
 0x372   :  { %v423_v11 = vrot.slane %v3089_v5, 2 }
 0x374   :  { %424 = vrot.lane.b32.xlu1 %v423_v11, %s2837_s3 }
 0x3e6   :  { %v425_v14 = vpop.permute.xlu1 %424 }
 0x3e7   :  { %2250 = vmatmul.mubr.msk.f32.vlgmr.msra.gmra.mrb[2].mxu1 %vm196_vm5, %v425_v14 }
 0x3e8   :  { %2398 = vmatpush1.bf16.msra.mxu1 %v2922_v13  ;;  %734 = vmatprep.mubr.f32.mxu1 %v2836_v7 }
 0x3e9   :  { %2400 = vmatprep.subr.bf16.mxu1 %v2934_v18 }
 0x3ec   :  { %2402 = vmatpush1.bf16.msra.mxu1 %v2953_v25 }
 0x3ed   :  { %2404 = vmatprep.subr.bf16.mxu1 %v2964_v29 }
 0x3f0   :  { %2406 = vmatpush1.bf16.msra.mxu1 %v2976_v33 }
 0x3f1   :  { %2408 = vmatprep.subr.bf16.mxu1 %v2980_v34 }
 0x3f4   :  { %2410 = vmatpush1.bf16.msra.mxu1 %v2995_v38 }
 0x3f5   :  { %2428 = vmatprep.subr.bf16.mxu1 %v2911_v8 }
 0x4ba   :  { %v494_v16 = vpop.f32.mrb[2].mxu1 }
 0x4bb   :  { %v501_v19 = vrot.slane %v494_v16, 4  ;;  %v496_v20 = vpop.f32.mrb[3].mxu1 }
 0x4bc   :  { %v502_v23 = vrot.slane %v496_v20, 4 }
 0x4bd   :  { %v505_v21 = vadd.f32 %v501_v19, %v3056_v10 }
 0x4be   :  { %v506_v24 = vadd.f32 %v502_v23, %v3065_v15 }
 0x4bf   :  { %v2251_v22 = vmul.f32 -1.442695, %v505_v21 }
 0x4c0   :  { %v2252_v36 = vmul.f32 -1.442695, %v506_v24 }
 0x4c1   :  { %2644 = vpow2.f32 %v2251_v22 }
 0x4c2   :  { %2646 = vtanh.f32 %v506_v24 }
 0x4cb   :  { %v2645_v26 = vpop.eup %2644 }
 0x4cc   :  { %v510_v27 = vadd.f32 1.0, %v2645_v26  ;;  %v2647_v28 = vpop.eup %2646 }
 0x4ce   :  { %2648 = vrcp.f32 %v510_v27 }
 0x4cf   :  { %2650 = vpow2.f32 %v2252_v36 }
 0x4d8   :  { %v2649_v31 = vpop.eup %2648 }
 0x4d9   :  { %v524_v32 = vmul.f32 %v2649_v31, %v2647_v28  ;;  %v523_v35 = vmul.f32 %v2649_v31, %v521_v30  ;;  %v2651_v37 = vpop.eup %2650 }
 0x4da   :  { %v517_v10 = vadd.f32 1.0, %v2651_v37 }
 0x4db   :  { %526 = vrot.lane.b32.xlu0 %v524_v32, %s2837_s3 }
 0x4dc   :  { %2652 = vrcp.f32 %v517_v10 }
 0x4e6   :  { %v2653_v15 = vpop.eup %2652 }
 0x54d   :  { %v527_v39 = vpop.permute.xlu0 %526 }
 0x54e   :  { %v529_v41 = vadd.f32 %v527_v39, %v523_v35 }
 0x550   :  { %2654 = vtanh.f32 %v529_v41  ;;  %v638_v60 = vrot.slane %v529_v41, 6 }
 0x55a   :  { %v2655_v43 = vpop.eup %2654 }
 0x55b   :  { %v3106_v45 = vmul.f32 %v2655_v43, %v2653_v15 }
 0x55d   :  { %v540_v46 = vrot.slane %v3106_v45, 4 }
 0x55f   :  { %541 = vrot.lane.b32.xlu1 %v540_v46, %s2837_s3 }
 0x5d1   :  { %v542_v47 = vpop.permute.xlu1 %541 }
 0x5d2   :  { %2253 = vmatmul.mubr.msk.f32.vlgmr.msra.gmra.mrb[6].mxu0 %vm196_vm5, %v542_v47 }
 0x5d3   :  { %2414 = vmatpush1.bf16.msra.mxu0 %v2922_v13  ;;  %846 = vmatprep.mubr.f32.mxu0 %v2836_v7 }
 0x5d4   :  { %2416 = vmatprep.subr.bf16.mxu0 %v2934_v18 }
 0x5d7   :  { %2418 = vmatpush1.bf16.msra.mxu0 %v2953_v25 }
 0x5d8   :  { %2420 = vmatprep.subr.bf16.mxu0 %v2964_v29 }
 0x5db   :  { %2422 = vmatpush1.bf16.msra.mxu0 %v2976_v33 }
 0x5dc   :  { %2424 = vmatprep.subr.bf16.mxu0 %v2980_v34 }
 0x5df   :  { %2426 = vmatpush1.bf16.msra.mxu0 %v2995_v38 }
 0x5e0   :  { %2444 = vmatprep.subr.bf16.mxu0 %v2911_v8 }
 0x6a5   :  { %v611_v48 = vpop.f32.mrb[6].mxu0 }
 0x6a6   :  { %v618_v49 = vrot.slane %v611_v48, 2  ;;  %v613_v50 = vpop.f32.mrb[7].mxu0 }
 0x6a7   :  { %v619_v53 = vrot.slane %v613_v50, 2 }
 0x6a8   :  { %v622_v51 = vadd.f32 %v618_v49, %v3060_v12 }
 0x6a9   :  { %v623_v55 = vadd.f32 %v619_v53, %v3069_v17 }
 0x6aa   :  { %v2254_v52 = vmul.f32 -1.442695, %v622_v51 }
 0x6ab   :  { %v2255_v8 = vmul.f32 -1.442695, %v623_v55 }
 0x6ac   :  { %2656 = vpow2.f32 %v2254_v52 }
 0x6ad   :  { %2658 = vtanh.f32 %v623_v55 }
 0x6b6   :  { %v2657_v57 = vpop.eup %2656 }
 0x6b7   :  { %v627_v58 = vadd.f32 1.0, %v2657_v57  ;;  %v2659_v59 = vpop.eup %2658 }
 0x6b9   :  { %2660 = vrcp.f32 %v627_v58 }
 0x6ba   :  { %2662 = vpow2.f32 %v2255_v8 }
 0x6c3   :  { %v2661_v61 = vpop.eup %2660 }
 0x6c4   :  { %v641_v62 = vmul.f32 %v2661_v61, %v2659_v59  ;;  %v640_v63 = vmul.f32 %v2661_v61, %v638_v60  ;;  %v2663_v0 = vpop.eup %2662 }
 0x6c5   :  { %v634_v12 = vadd.f32 1.0, %v2663_v0 }
 0x6c6   :  { %643 = vrot.lane.b32.xlu0 %v641_v62, %s2837_s3 }
 0x6c7   :  { %2664 = vrcp.f32 %v634_v12 }
 0x6d1   :  { %v2665_v17 = vpop.eup %2664 }
 0x738   :  { %v644_v1 = vpop.permute.xlu0 %643 }
 0x739   :  { %v646_v4 = vadd.f32 %v644_v1, %v640_v63 }
 0x73b   :  { %2666 = vtanh.f32 %v646_v4  ;;  %v757_v30 = vrot.slane %v646_v4, 6 }
 0x745   :  { %v2667_v11 = vpop.eup %2666 }
 0x746   :  { %v3123_v14 = vmul.f32 %v2667_v11, %v2665_v17 }
 0x748   :  { %v665_v16 = vrot.slane %v3123_v14, 6 }
 0x74a   :  { %666 = vrot.lane.b32.xlu1 %v665_v16, %s2837_s3 }
 0x7bc   :  { %v667_v19 = vpop.permute.xlu1 %666 }
 0x7bd   :  { %2256 = vmatmul.mubr.msk.f32.vlgmr.msra.gmra.mrb[4].mxu1 %vm196_vm5, %v667_v19 }
 0x7be   :  { %2430 = vmatpush1.bf16.msra.mxu1 %v2922_v13  ;;  %961 = vmatprep.mubr.f32.mxu1 %v2836_v7 }
 0x7bf   :  { %2432 = vmatprep.subr.bf16.mxu1 %v2934_v18 }
 0x7c2   :  { %2434 = vmatpush1.bf16.msra.mxu1 %v2953_v25 }
 0x7c3   :  { %2436 = vmatprep.subr.bf16.mxu1 %v2964_v29 }
 0x7c6   :  { %2438 = vmatpush1.bf16.msra.mxu1 %v2976_v33 }
 0x7c7   :  { %2440 = vmatprep.subr.bf16.mxu1 %v2980_v34 }
 0x7ca   :  { %2442 = vmatpush1.bf16.msra.mxu1 %v2995_v38 }
 0x890   :  { %v736_v20 = vpop.f32.mrb[4].mxu1 }
 0x891   :  { %v741_v21 = vadd.f32 %v736_v20, %v3040_v2  ;;  %v738_v22 = vpop.f32.mrb[5].mxu1 }
 0x892   :  { %v742_v24 = vadd.f32 %v738_v22, %v3048_v6 }
 0x893   :  { %v2257_v23 = vmul.f32 -1.442695, %v741_v21 }
 0x894   :  { %v2258_v36 = vmul.f32 -1.442695, %v742_v24 }
 0x895   :  { %2668 = vpow2.f32 %v2257_v23 }
 0x896   :  { %2670 = vtanh.f32 %v742_v24 }
 0x89f   :  { %v2669_v26 = vpop.eup %2668 }
 0x8a0   :  { %v746_v27 = vadd.f32 1.0, %v2669_v26  ;;  %v2671_v28 = vpop.eup %2670 }
 0x8a2   :  { %2672 = vrcp.f32 %v746_v27 }
 0x8a3   :  { %2674 = vpow2.f32 %v2258_v36 }
 0x8ac   :  { %v2673_v31 = vpop.eup %2672 }
 0x8ad   :  { %v760_v32 = vmul.f32 %v2673_v31, %v2671_v28  ;;  %v759_v35 = vmul.f32 %v2673_v31, %v757_v30  ;;  %v2675_v37 = vpop.eup %2674 }
 0x8ae   :  { %v753_v10 = vadd.f32 1.0, %v2675_v37 }
 0x8af   :  { %762 = vrot.lane.b32.xlu0 %v760_v32, %s2837_s3 }
 0x8b0   :  { %2676 = vrcp.f32 %v753_v10 }
 0x8ba   :  { %v2677_v15 = vpop.eup %2676 }
 0x921   :  { %v763_v39 = vpop.permute.xlu0 %762 }
 0x922   :  { %v765_v41 = vadd.f32 %v763_v39, %v759_v35 }
 0x924   :  { %2678 = vtanh.f32 %v765_v41 }
 0x92e   :  { %v2679_v43 = vpop.eup %2678 }
 0x92f   :  { %v767_v46 = vmul.f32 %v2679_v43, %v2677_v15 }
 0x931   :  { %769 = vrot.lane.b32.xlu1 %v767_v46, %s2837_s3 }
 0x9a3   :  { %v3140_v47 = vpop.permute.xlu1 %769 }
 0x9a4   :  { %2259 = vmatmul.mubr.msk.f32.vlgmr.msra.gmra.mrb[8].mxu0 %vm196_vm5, %v3140_v47 }
 0x9a5   :  { %2446 = vmatpush1.bf16.msra.mxu0 %v2922_v13  ;;  %1076 = vmatprep.mubr.f32.mxu0 %v2836_v7 }
 0x9a6   :  { %2448 = vmatprep.subr.bf16.mxu0 %v2934_v18 }
 0x9a9   :  { %2450 = vmatpush1.bf16.msra.mxu0 %v2953_v25 }
 0x9aa   :  { %2452 = vmatprep.subr.bf16.mxu0 %v2964_v29 }
 0x9ad   :  { %2454 = vmatpush1.bf16.msra.mxu0 %v2976_v33  ;;  %v875_v33 = vrot.slane %v765_v41, 6 }
 0x9ae   :  { %2456 = vmatprep.subr.bf16.mxu0 %v2980_v34 }
 0x9b1   :  { %2458 = vmatpush1.bf16.msra.mxu0 %v2995_v38 }
 0xa77   :  { %v848_v48 = vpop.f32.mrb[8].mxu0 }
 0xa78   :  { %v855_v49 = vrot.slane %v848_v48, 6  ;;  %v850_v50 = vpop.f32.mrb[9].mxu0 }
 0xa79   :  { %v856_v52 = vrot.slane %v850_v50, 6 }
 0xa7a   :  { %v859_v51 = vadd.f32 %v855_v49, %v3044_v3 }
 0xa7b   :  { %v860_v18 = vadd.f32 %v856_v52, %v3052_v9 }
 0xa7c   :  { %v2260_v13 = vmul.f32 -1.442695, %v859_v51 }
 0xa7d   :  { %v2261_v38 = vmul.f32 -1.442695, %v860_v18 }
 0xa7e   :  { %2680 = vpow2.f32 %v2260_v13 }
 0xa7f   :  { %2682 = vtanh.f32 %v860_v18 }
 0xa88   :  { %v2681_v53 = vpop.eup %2680 }
 0xa89   :  { %v864_v25 = vadd.f32 1.0, %v2681_v53  ;;  %v2683_v29 = vpop.eup %2682 }
 0xa8b   :  { %2684 = vrcp.f32 %v864_v25 }
 0xa8c   :  { %2686 = vpow2.f32 %v2261_v38  ;;  %v1131_v38 = vld [vmem:[%s3506_s4 + $0x38] sm:$0xff] }
 0xa95   :  { %v2685_v55 = vpop.eup %2684 }
 0xa96   :  { %v878_v34 = vmul.f32 %v2685_v55, %v2683_v29  ;;  %v877_v57 = vmul.f32 %v2685_v55, %v875_v33  ;;  %v2687_v58 = vpop.eup %2686  ;;  %v1127_v33 = vld [vmem:[%s3506_s4 + $0x18] sm:$0xff] }
 0xa97   :  { %v871_v59 = vadd.f32 1.0, %v2687_v58 }
 0xa98   :  { %880 = vrot.lane.b32.xlu0 %v878_v34, %s2837_s3  ;;  %v1126_v34 = vld [vmem:[%s3506_s4 + $0x10] sm:$0xff] }
 0xa99   :  { %2688 = vrcp.f32 %v871_v59 }
 0xaa3   :  { %v2689_v62 = vpop.eup %2688 }
 0xb0a   :  { %v881_v60 = vpop.permute.xlu0 %880 }
 0xb0b   :  { %v883_v61 = vadd.f32 %v881_v60, %v877_v57  ;;  %v1129_v57 = vld [vmem:[%s3506_s4 + $0x28] sm:$0xff]  ;;  %v1128_v60 = vld [vmem:[%s3506_s4 + $0x20] sm:$0xff] }
 0xb0c   :  { %v2463_v59 = vpack.c.bf16 %v1131_v38, %v1129_v57  ;;  %v1140_v57 = vld [vmem:[%s3508_s6] sm:$0x3] }
 0xb0d   :  { %2690 = vtanh.f32 %v883_v61  ;;  %v990_v24 = vrot.slane %v883_v61, 6  ;;  %v1130_v61 = vld [vmem:[%s3506_s4 + $0x30] sm:$0xff]  ;;  %v1145_v38 = vrot.slane %v1140_v57, %v76_v42 }
 0xb17   :  { %v2691_v63 = vpop.eup %2690 }
 0xb18   :  { %v3155_v8 = vmul.f32 %v2691_v63, %v2689_v62  ;;  %v2465_v62 = vpack.c.bf16 %v1130_v61, %v1128_v60 }
 0xb1a   :  { %v892_v0 = vrot.slane %v3155_v8, 2 }
 0xb1c   :  { %893 = vrot.lane.b32.xlu1 %v892_v0, %s2837_s3 }
 0xb8e   :  { %v894_v12 = vpop.permute.xlu1 %893 }
 0xb8f   :  { %2262 = vmatmul.mubr.msk.f32.vlgmr.msra.gmra.mrb[6].mxu1 %vm196_vm5, %v894_v12 }
 0xb90   :  { %1222 = vmatprep.mubr.f32.mxu1 %v2836_v7 }
 0xc62   :  { %v963_v1 = vpop.f32.mrb[6].mxu1 }
 0xc63   :  { %v970_v4 = vrot.slane %v963_v1, 4  ;;  %v965_v17 = vpop.f32.mrb[7].mxu1 }
 0xc64   :  { %v971_v19 = vrot.slane %v965_v17, 4  ;;  %v1135_v17 = vld [vmem:[%s3506_s4 + $0x58] sm:$0xff] }
 0xc65   :  { %v974_v11 = vadd.f32 %v970_v4, %v3040_v2  ;;  %v1133_v4 = vld [vmem:[%s3506_s4 + $0x48] sm:$0xff] }
 0xc66   :  { %v975_v20 = vadd.f32 %v971_v19, %v3048_v6  ;;  %v1132_v19 = vld [vmem:[%s3506_s4 + $0x40] sm:$0xff] }
 0xc67   :  { %v2263_v16 = vmul.f32 -1.442695, %v974_v11  ;;  %v1236_v11 = vld [vmem:[%s3507_s5 + $0x8] sm:$0xff] }
 0xc68   :  { %v2264_v30 = vmul.f32 -1.442695, %v975_v20 }
 0xc69   :  { %2692 = vpow2.f32 %v2263_v16  ;;  %v1238_v16 = vld [vmem:[%s3507_s5 + $0x18] sm:$0xff] }
 0xc6a   :  { %2694 = vtanh.f32 %v975_v20  ;;  %v1134_v20 = vld [vmem:[%s3506_s4 + $0x50] sm:$0xff] }
 0xc73   :  { %v2693_v21 = vpop.eup %2692 }
 0xc74   :  { %v979_v22 = vadd.f32 1.0, %v2693_v21  ;;  %v2695_v23 = vpop.eup %2694  ;;  %v3231_v21 = vpack.c.bf16 %v1238_v16, %v1236_v11 }
 0xc76   :  { %2696 = vrcp.f32 %v979_v22  ;;  %v2469_v22 = vpack.c.bf16 %v1134_v20, %v1132_v19  ;;  %2476 = vmatprep.subr.bf16.mxu0 %v3231_v21 }
 0xc77   :  { %2698 = vpow2.f32 %v2264_v30  ;;  %v1139_v30 = vld [vmem:[%s3506_s4 + $0x78] sm:$0xff] }
 0xc80   :  { %v2697_v26 = vpop.eup %2696 }
 0xc81   :  { %v993_v27 = vmul.f32 %v2697_v26, %v2695_v23  ;;  %v992_v28 = vmul.f32 %v2697_v26, %v990_v24  ;;  %v2699_v31 = vpop.eup %2698  ;;  %v1235_v23 = vld [vmem:[%s3507_s5] sm:$0xff]  ;;  %v1237_v24 = vld [vmem:[%s3507_s5 + $0x10] sm:$0xff]  ;;  %v1137_v26 = vld [vmem:[%s3506_s4 + $0x68] sm:$0xff] }
 0xc82   :  { %v986_v2 = vadd.f32 1.0, %v2699_v31  ;;  %v1240_v31 = vld [vmem:[%s3507_s5 + $0x28] sm:$0xff] }
 0xc83   :  { %995 = vrot.lane.b32.xlu0 %v993_v27, %s2837_s3 }
 0xc84   :  { %2700 = vrcp.f32 %v986_v2  ;;  %v1242_v2 = vld [vmem:[%s3507_s5 + $0x38] sm:$0xff] }
 0xc8e   :  { %v2701_v6 = vpop.eup %2700 }
 0xcf5   :  { %v996_v32 = vpop.permute.xlu0 %995 }
 0xcf6   :  { %v998_v35 = vadd.f32 %v996_v32, %v992_v28  ;;  %v3242_v28 = vpack.c.bf16 %v1237_v24, %v1235_v23  ;;  %v2471_v32 = vpack.c.bf16 %v1139_v30, %v1137_v26 }
 0xcf8   :  { %2702 = vtanh.f32 %v998_v35  ;;  %v1105_v18 = vrot.slane %v998_v35, 6  ;;  %v3256_v35 = vpack.c.bf16 %v1242_v2, %v1240_v31 }
 0xd02   :  { %v2703_v36 = vpop.eup %2702 }
 0xd03   :  { %v1000_v37 = vmul.f32 %v2703_v36, %v2701_v6  ;;  %v1136_v6 = vld [vmem:[%s3506_s4 + $0x60] sm:$0xff]  ;;  %v1138_v36 = vld [vmem:[%s3506_s4 + $0x70] sm:$0xff] }
 0xd05   :  { %v1007_v10 = vrot.slane %v1000_v37, 4 }
 0xd07   :  { %1008 = vrot.lane.b32.xlu1 %v1007_v10, %s2837_s3  ;;  %v2473_v10 = vpack.c.bf16 %v1138_v36, %v1136_v6 }
 0xd0b   :  { %416 = vrot.lane.b32.xlu1 %v3089_v5, %s2837_s3 }
 0xd0f   :  { %650 = vrot.lane.b32.xlu1 %v3123_v14, %s2837_s3 }
 0xd13   :  { %1002 = vrot.lane.b32.xlu1 %v1000_v37, %s2837_s3  ;;  %v1239_v37 = vld [vmem:[%s3507_s5 + $0x20] sm:$0xff] }
 0xd79   :  { %v1009_v39 = vpop.permute.xlu1 %1008 }
 0xd7a   :  { %2265 = vmatmul.mubr.msk.f32.vlgmr.msra.gmra.mrb[10].mxu0 %vm196_vm5, %v1009_v39  ;;  %v1241_v39 = vld [vmem:[%s3507_s5 + $0x30] sm:$0xff] }
 0xd7b   :  { %1323 = vmatprep.mubr.f32.mxu0 %v2836_v7  ;;  %2478 = vmatpush1.bf16.msra.mxu0 %v3242_v28 }
 0xd7c   :  { %2480 = vmatprep.subr.bf16.mxu0 %v3256_v35 }
 0xd7d   :  { %v417_v41 = vpop.permute.xlu1 %416 }
 0xd7e   :  { %420 = vst.msk [vmem:[#allocation2] sm:$0xc] %vm419_vm6, %v417_v41 }
 0xd7f   :  { %422 = vst.msk [vmem:[#allocation2 + $0xa] sm:$0xc] %vm421_vm7, %v417_v41  ;;  %v3272_v41 = vpack.c.bf16 %v1241_v39, %v1239_v37 }
 0xd81   :  { %v651_v5 = vpop.permute.xlu1 %650  ;;  %2482 = vmatpush1.bf16.msra.mxu0 %v3272_v41 }
 0xd82   :  { %654 = vst.msk [vmem:[#allocation2] sm:$0xc0] %vm653_vm8, %v651_v5 }
 0xd83   :  { %656 = vst.msk [vmem:[#allocation2 + $0x2] sm:$0xc0] %vm655_vm9, %v651_v5 }
 0xd84   :  { %772 = vst.msk [vmem:[#allocation2 + $0x8] sm:$0x3] %vm299_vm3, %v3140_v47 }
 0xd85   :  { %773 = vst.msk [vmem:[#allocation2 + $0x6] sm:$0x3] %vm301_vm4, %v3140_v47  ;;  %v1003_v14 = vpop.permute.xlu1 %1002 }
 0xd86   :  { %1005 = vst.msk [vmem:[#allocation2 + $0x8] sm:$0x30] %vm536_vm10, %v1003_v14 }
 0xd87   :  { %1006 = vst.msk [vmem:[#allocation2 - $0x2] sm:$0x30] %vm538_vm11, %v1003_v14  ;;  %v1244_v14 = vld [vmem:[%s3507_s5 + $0x48] sm:$0xff] }
 0xe4d   :  { %v1078_v15 = vpop.f32.mrb[10].mxu0 }
 0xe4e   :  { %v1085_v43 = vrot.slane %v1078_v15, 2  ;;  %v1080_v46 = vpop.f32.mrb[11].mxu0  ;;  %v1246_v15 = vld [vmem:[%s3507_s5 + $0x58] sm:$0xff] }
 0xe4f   :  { %v1086_v50 = vrot.slane %v1080_v46, 2  ;;  %v1243_v46 = vld [vmem:[%s3507_s5 + $0x40] sm:$0xff] }
 0xe50   :  { %v1089_v48 = vadd.f32 %v1085_v43, %v3044_v3  ;;  %v1125_v3 = vld [vmem:[%s3506_s4 + $0x8] sm:$0xff]  ;;  %v3283_v43 = vpack.c.bf16 %v1246_v15, %v1244_v14 }
 0xe51   :  { %v1090_v51 = vadd.f32 %v1086_v50, %v3052_v9  ;;  %v1124_v9 = vld [vmem:[%s3506_s4] sm:$0xff]  ;;  %v2459_v55 = vpack.c.bf16 %v1127_v33, %v1125_v3 }
 0xe52   :  { %v2266_v49 = vmul.f32 -1.442695, %v1089_v48  ;;  %v2461_v58 = vpack.c.bf16 %v1126_v34, %v1124_v9  ;;  %v1245_v48 = vld [vmem:[%s3507_s5 + $0x50] sm:$0xff]  ;;  %2484 = vmatprep.subr.bf16.mxu0 %v3283_v43 }
 0xe53   :  { %2460 = vmatprep.subr.bf16.mxu1 %v2459_v55  ;;  %v2267_v63 = vmul.f32 -1.442695, %v1090_v51 }
 0xe54   :  { %2704 = vpow2.f32 %v2266_v49  ;;  %2462 = vmatpush1.bf16.msra.mxu1 %v2461_v58  ;;  %v3292_v49 = vpack.c.bf16 %v1245_v48, %v1243_v46  ;;  %v1149_v58 = vrot.slane %v1140_v57, %v80_v44 }
 0xe55   :  { %2706 = vtanh.f32 %v1090_v51  ;;  %2464 = vmatprep.subr.bf16.mxu1 %v2463_v59 }
 0xe56   :  { %2486 = vmatpush1.bf16.msra.mxu0 %v3292_v49 }
 0xe58   :  { %2466 = vmatpush1.bf16.msra.mxu1 %v2465_v62 }
 0xe5e   :  { %v2705_v13 = vpop.eup %2704 }
 0xe5f   :  { %v1094_v52 = vadd.f32 1.0, %v2705_v13  ;;  %v2707_v47 = vpop.eup %2706  ;;  %v1248_v13 = vld [vmem:[%s3507_s5 + $0x68] sm:$0xff] }
 0xe61   :  { %2708 = vrcp.f32 %v1094_v52  ;;  %v1250_v52 = vld [vmem:[%s3507_s5 + $0x78] sm:$0xff] }
 0xe62   :  { %2710 = vpow2.f32 %v2267_v63 }
 0xe6b   :  { %v2709_v53 = vpop.eup %2708 }
 0xe6c   :  { %v1108_v25 = vmul.f32 %v2709_v53, %v2707_v47  ;;  %v1107_v29 = vmul.f32 %v2709_v53, %v1105_v18  ;;  %v3302_v18 = vpack.c.bf16 %v1250_v52, %v1248_v13  ;;  %v1247_v53 = vld [vmem:[%s3507_s5 + $0x60] sm:$0xff] }
 0xe6e   :  { %1110 = vrot.lane.b32.xlu0 %v1108_v25, %s2837_s3  ;;  %v1249_v25 = vld [vmem:[%s3507_s5 + $0x70] sm:$0xff]  ;;  %2488 = vmatprep.subr.bf16.mxu0 %v3302_v18 }
 0xe72   :  { %533 = vrot.lane.b32.xlu0 %v3106_v45, %s2837_s3  ;;  %v2711_v45 = vpop.eup %2710 }
 0xe73   :  { %v1101_v0 = vadd.f32 1.0, %v2711_v45 }
 0xe75   :  { %2712 = vrcp.f32 %v1101_v0 }
 0xe76   :  { %887 = vrot.lane.b32.xlu0 %v3155_v8, %s2837_s3  ;;  %v2467_v8 = vpack.c.bf16 %v1135_v17, %v1133_v4 }
 0xe78   :  { %2468 = vmatprep.subr.bf16.mxu1 %v2467_v8 }
 0xe79   :  { %2470 = vmatpush1.bf16.msra.mxu1 %v2469_v22 }
 0xe7a   :  { %2472 = vmatprep.subr.bf16.mxu1 %v2471_v32 }
 0xe7d   :  { %2474 = vmatpush1.bf16.msra.mxu1 %v2473_v10 }
 0xe7e   :  { %2492 = vmatprep.subr.bf16.mxu1 %v3231_v21 }
 0xe7f   :  { %v2713_v50 = vpop.eup %2712 }
 0xee0   :  { %v1111_v12 = vpop.permute.xlu0 %1110 }
 0xee1   :  { %v1113_v1 = vadd.f32 %v1111_v12, %v1107_v29  ;;  %v3310_v29 = vpack.c.bf16 %v1249_v25, %v1247_v53 }
 0xee3   :  { %2714 = vtanh.f32 %v1113_v1  ;;  %2490 = vmatpush1.bf16.msra.mxu0 %v3310_v29 }
 0xee4   :  { %v534_v27 = vpop.permute.xlu0 %533  ;;  %2508 = vmatprep.subr.bf16.mxu0 %v3231_v21 }
 0xee5   :  { %537 = vst.msk [vmem:[#allocation2] sm:$0x30] %vm536_vm10, %v534_v27 }
 0xee6   :  { %539 = vst.msk [vmem:[#allocation2 + $0x6] sm:$0x30] %vm538_vm11, %v534_v27  ;;  %1324 = vmatmul.mubr.f32.vlgmr.msra.gmra.mrb[12].mxu0 %v2836_v7 }
 0xee7   :  { %2510 = vmatpush1.bf16.msra.mxu0 %v3242_v28  ;;  %1539 = vmatprep.mubr.f32.mxu0 %v2836_v7 }
 0xee8   :  { %v888_v5 = vpop.permute.xlu0 %887  ;;  %2512 = vmatprep.subr.bf16.mxu0 %v3256_v35 }
 0xee9   :  { %890 = vst.msk [vmem:[#allocation2 + $0x8] sm:$0xc] %vm419_vm6, %v888_v5 }
 0xeea   :  { %891 = vst.msk [vmem:[#allocation2 + $0x2] sm:$0xc] %vm421_vm7, %v888_v5 }
 0xeeb   :  { %2514 = vmatpush1.bf16.msra.mxu0 %v3272_v41 }
 0xeec   :  { %2516 = vmatprep.subr.bf16.mxu0 %v3283_v43 }
 0xeed   :  { %v2715_v51 = vpop.eup %2714 }
 0xeee   :  { %v1115_v47 = vmul.f32 %v2715_v51, %v2713_v50 }
 0xeef   :  { %2518 = vmatpush1.bf16.msra.mxu0 %v3292_v49 }
 0xef0   :  { %1117 = vrot.lane.b32.xlu0 %v1115_v47, %s2837_s3  ;;  %2520 = vmatprep.subr.bf16.mxu0 %v3302_v18 }
 0xef3   :  { %2522 = vmatpush1.bf16.msra.mxu0 %v3310_v29 }
 0xef4   :  { %2540 = vmatprep.subr.bf16.mxu0 %v3231_v21 }
 0xf62   :  { %v1118_v3 = vpop.permute.xlu0 %1117 }
 0xf63   :  { %1120 = vst.msk [vmem:[#allocation2 + $0x8] sm:$0xc0] %vm653_vm8, %v1118_v3 }
 0xf64   :  { %1121 = vst.msk [vmem:[#allocation2 - $0x6] sm:$0xc0] %vm655_vm9, %v1118_v3 }
 0xf6a   :  { %v1123_v9 = vld [vmem:[#allocation2 + $0x8] sm:$0xff] }
 0xf6b   :  { %v1122_v33 = vld [vmem:[#allocation2] sm:$0xff] }
 0xf6c   :  { %2268 = vmatmul.mubr.msk.f32.vlgmr.msra.gmra.mrb[8].mxu1 %vm196_vm5, %v1122_v33 }
 0xf6d   :  { %1228 = vmatprep.mubr.f32.mxu1 %v2836_v7  ;;  %2494 = vmatpush1.bf16.msra.mxu1 %v3242_v28 }
 0xf6e   :  { %2496 = vmatprep.subr.bf16.mxu1 %v3256_v35 }
 0xf70   :  { %2269 = vmatmul.mubr.msk.f32.gmra.mrb[10].mxu1 %vm196_vm5, %v1123_v9 }
 0xf71   :  { %2498 = vmatpush1.bf16.msra.mxu1 %v3272_v41  ;;  %1429 = vmatprep.mubr.f32.mxu1 %v2836_v7 }
 0xf72   :  { %2500 = vmatprep.subr.bf16.mxu1 %v3283_v43 }
 0xf75   :  { %2502 = vmatpush1.bf16.msra.mxu1 %v3292_v49 }
 0xf76   :  { %2504 = vmatprep.subr.bf16.mxu1 %v3302_v18 }
 0xf79   :  { %2506 = vmatpush1.bf16.msra.mxu1 %v3310_v29 }
 0xf7a   :  { %2524 = vmatprep.subr.bf16.mxu1 %v3231_v21 }
 0xfb9   :  { %v1325_v55 = vpop.f32.mrb[12].mxu0 }
 0xfba   :  { %v1327_v34 = vpop.f32.mrb[13].mxu0 }
0x103f   :  { %v1224_v59 = vpop.f32.mrb[8].mxu1 }
0x1040   :  { %v1225_v60 = vadd.f32 %v1224_v59, %v1145_v38  ;;  %v1226_v61 = vpop.f32.mrb[9].mxu1 }
0x1041   :  { %v1227_v62 = vadd.f32 %v1226_v61, %v1149_v58 }
0x1042   :  { %v1691_v12 = vrot.slane %v1225_v60, 6  ;;  %v1801_v1 = vrot.slane %v1225_v60, 2 }
0x1043   :  { %v1230_v63 = vpop.f32.mrb[10].mxu1  ;;  %v1692_v17 = vrot.slane %v1227_v62, 6  ;;  %v1802_v11 = vrot.slane %v1227_v62, 2 }
0x1044   :  { %v1231_v45 = vadd.f32 %v1230_v63, %v1145_v38  ;;  %v1232_v0 = vpop.f32.mrb[11].mxu1 }
0x1045   :  { %v1233_v4 = vadd.f32 %v1232_v0, %v1149_v58 }
0x1046   :  { %v1253_v8 = vrot.slane %v1231_v45, 6  ;;  %v1354_v16 = vrot.slane %v1231_v45, 2  ;;  %v3349_v42 = vsel %vm3030_vm1, %v1231_v45, %v1691_v12  ;;  %v3353_v40 = vsel %vm3030_vm1, %v1231_v45, %v1801_v1 }
0x1047   :  { %v1254_v44 = vrot.slane %v1233_v4, 6  ;;  %v1355_v19 = vrot.slane %v1233_v4, 2  ;;  %v3357_v20 = vsel %vm3034_vm2, %v1233_v4, %v1692_v17  ;;  %v3361_v22 = vsel %vm3034_vm2, %v1233_v4, %v1802_v11 }
0x1048   :  { %v3365_v23 = vsel %vm3030_vm1, %v1225_v60, %v1253_v8  ;;  %v3369_v24 = vsel %vm3030_vm1, %v1225_v60, %v1354_v16 }
0x1049   :  { %v1330_v26 = vadd.f32 %v1325_v55, %v3365_v23  ;;  %v3374_v27 = vsel %vm3034_vm2, %v1227_v62, %v1254_v44  ;;  %v3378_v30 = vsel %vm3034_vm2, %v1227_v62, %v1355_v19 }
0x104a   :  { %v1331_v2 = vadd.f32 %v1327_v34, %v3374_v27 }
0x104b   :  { %v2270_v31 = vmul.f32 -1.442695, %v1330_v26 }
0x104c   :  { %v2271_v10 = vmul.f32 -1.442695, %v1331_v2 }
0x104d   :  { %2716 = vpow2.f32 %v2270_v31 }
0x104e   :  { %2718 = vtanh.f32 %v1331_v2 }
0x1057   :  { %v2717_v32 = vpop.eup %2716 }
0x1058   :  { %v1335_v6 = vadd.f32 1.0, %v2717_v32  ;;  %v2719_v54 = vpop.eup %2718 }
0x105a   :  { %2720 = vrcp.f32 %v1335_v6 }
0x105b   :  { %2722 = vpow2.f32 %v2271_v10 }
0x1064   :  { %v2721_v36 = vpop.eup %2720 }
0x1065   :  { %v1346_v37 = vmul.f32 %v2721_v36, %v2719_v54  ;;  %v2723_v39 = vpop.eup %2722  ;;  %v1345_v56 = vmul.f32 0.0, %v2721_v36 }
0x1066   :  { %v1342_v5 = vadd.f32 1.0, %v2723_v39 }
0x1067   :  { %1348 = vrot.lane.b32.xlu1 %v1346_v37, %s2837_s3 }
0x1068   :  { %2724 = vrcp.f32 %v1342_v5 }
0x1072   :  { %v2725_v46 = vpop.eup %2724 }
0x10d9   :  { %v1349_v14 = vpop.permute.xlu1 %1348 }
0x10da   :  { %v1351_v15 = vadd.f32 %v1349_v14, %v1345_v56 }
0x10dc   :  { %2726 = vtanh.f32 %v1351_v15  ;;  %v1458_v57 = vrot.slane %v1351_v15, 6 }
0x10e6   :  { %v2727_v48 = vpop.eup %2726 }
0x10e7   :  { %v1353_v50 = vmul.f32 %v2727_v48, %v2725_v46 }
0x10e9   :  { %1361 = vrot.lane.b32.xlu0 %v1353_v50, %s2837_s3 }
0x115b   :  { %v1362_v51 = vpop.permute.xlu0 %1361 }
0x115c   :  { %2272 = vmatmul.mubr.msk.f32.vlgmr.msra.gmra.mrb[12].mxu1 %vm196_vm5, %v1362_v51 }
0x115d   :  { %2526 = vmatpush1.bf16.msra.mxu1 %v3242_v28  ;;  %1649 = vmatprep.mubr.f32.mxu1 %v2836_v7 }
0x115e   :  { %2528 = vmatprep.subr.bf16.mxu1 %v3256_v35 }
0x1161   :  { %2530 = vmatpush1.bf16.msra.mxu1 %v3272_v41 }
0x1162   :  { %2532 = vmatprep.subr.bf16.mxu1 %v3283_v43 }
0x1165   :  { %2534 = vmatpush1.bf16.msra.mxu1 %v3292_v49 }
0x1166   :  { %2536 = vmatprep.subr.bf16.mxu1 %v3302_v18 }
0x1169   :  { %2538 = vmatpush1.bf16.msra.mxu1 %v3310_v29 }
0x116a   :  { %2556 = vmatprep.subr.bf16.mxu1 %v3231_v21 }
0x122f   :  { %v1431_v13 = vpop.f32.mrb[12].mxu1 }
0x1230   :  { %v1438_v52 = vrot.slane %v1431_v13, 6  ;;  %v1433_v47 = vpop.f32.mrb[13].mxu1 }
0x1231   :  { %v1439_v3 = vrot.slane %v1433_v47, 6 }
0x1232   :  { %v1442_v53 = vadd.f32 %v1438_v52, %v3369_v24 }
0x1233   :  { %v1443_v33 = vadd.f32 %v1439_v3, %v3378_v30 }
0x1234   :  { %v2273_v25 = vmul.f32 -1.442695, %v1442_v53 }
0x1235   :  { %v2274_v60 = vmul.f32 -1.442695, %v1443_v33 }
0x1236   :  { %2728 = vpow2.f32 %v2273_v25 }
0x1237   :  { %2730 = vtanh.f32 %v1443_v33 }
0x1240   :  { %v2729_v9 = vpop.eup %2728 }
0x1241   :  { %v1447_v55 = vadd.f32 1.0, %v2729_v9  ;;  %v2731_v34 = vpop.eup %2730 }
0x1243   :  { %2732 = vrcp.f32 %v1447_v55 }
0x1244   :  { %2734 = vpow2.f32 %v2274_v60 }
0x124d   :  { %v2733_v38 = vpop.eup %2732 }
0x124e   :  { %v1461_v58 = vmul.f32 %v2733_v38, %v2731_v34  ;;  %v1460_v59 = vmul.f32 %v2733_v38, %v1458_v57  ;;  %v2735_v61 = vpop.eup %2734 }
0x124f   :  { %v1454_v62 = vadd.f32 1.0, %v2735_v61 }
0x1250   :  { %1463 = vrot.lane.b32.xlu1 %v1461_v58, %s2837_s3 }
0x1251   :  { %2736 = vrcp.f32 %v1454_v62 }
0x125b   :  { %v2737_v0 = vpop.eup %2736 }
0x12c2   :  { %v1464_v63 = vpop.permute.xlu1 %1463 }
0x12c3   :  { %v1466_v45 = vadd.f32 %v1464_v63, %v1460_v59 }
0x12c5   :  { %2738 = vtanh.f32 %v1466_v45  ;;  %v1568_v54 = vrot.slane %v1466_v45, 6 }
0x12cf   :  { %v2739_v12 = vpop.eup %2738 }
0x12d0   :  { %v1468_v1 = vmul.f32 %v2739_v12, %v2737_v0 }
0x12d2   :  { %v1470_v4 = vrot.slane %v1468_v1, 2 }
0x12d4   :  { %1471 = vrot.lane.b32.xlu0 %v1470_v4, %s2837_s3 }
0x1346   :  { %v1472_v17 = vpop.permute.xlu0 %1471 }
0x1347   :  { %2275 = vmatmul.mubr.msk.f32.vlgmr.msra.gmra.mrb[14].mxu0 %vm196_vm5, %v1472_v17 }
0x1348   :  { %2542 = vmatpush1.bf16.msra.mxu0 %v3242_v28  ;;  %1767 = vmatprep.mubr.f32.mxu0 %v2836_v7 }
0x1349   :  { %2544 = vmatprep.subr.bf16.mxu0 %v3256_v35 }
0x134c   :  { %2546 = vmatpush1.bf16.msra.mxu0 %v3272_v41 }
0x134d   :  { %2548 = vmatprep.subr.bf16.mxu0 %v3283_v43 }
0x1350   :  { %2550 = vmatpush1.bf16.msra.mxu0 %v3292_v49 }
0x1351   :  { %2552 = vmatprep.subr.bf16.mxu0 %v3302_v18 }
0x1354   :  { %2554 = vmatpush1.bf16.msra.mxu0 %v3310_v29 }
0x1355   :  { %2572 = vmatprep.subr.bf16.mxu0 %v3231_v21 }
0x141a   :  { %v1541_v11 = vpop.f32.mrb[14].mxu0 }
0x141b   :  { %v1548_v8 = vrot.slane %v1541_v11, 4  ;;  %v1543_v16 = vpop.f32.mrb[15].mxu0 }
0x141c   :  { %v1549_v26 = vrot.slane %v1543_v16, 4 }
0x141d   :  { %v1552_v44 = vadd.f32 %v1548_v8, %v3365_v23 }
0x141e   :  { %v1553_v31 = vadd.f32 %v1549_v26, %v3374_v27 }
0x141f   :  { %v2276_v19 = vmul.f32 -1.442695, %v1552_v44 }
0x1420   :  { %v2277_v39 = vmul.f32 -1.442695, %v1553_v31 }
0x1421   :  { %2740 = vpow2.f32 %v2276_v19 }
0x1422   :  { %2742 = vtanh.f32 %v1553_v31 }
0x142b   :  { %v2741_v2 = vpop.eup %2740 }
0x142c   :  { %v1557_v32 = vadd.f32 1.0, %v2741_v2  ;;  %v2743_v6 = vpop.eup %2742 }
0x142e   :  { %2744 = vrcp.f32 %v1557_v32 }
0x142f   :  { %2746 = vpow2.f32 %v2277_v39 }
0x1438   :  { %v2745_v36 = vpop.eup %2744 }
0x1439   :  { %v1571_v37 = vmul.f32 %v2745_v36, %v2743_v6  ;;  %v1570_v10 = vmul.f32 %v2745_v36, %v1568_v54  ;;  %v2747_v5 = vpop.eup %2746 }
0x143a   :  { %v1564_v23 = vadd.f32 1.0, %v2747_v5 }
0x143b   :  { %1573 = vrot.lane.b32.xlu1 %v1571_v37, %s2837_s3 }
0x143c   :  { %2748 = vrcp.f32 %v1564_v23 }
0x1446   :  { %v2749_v27 = vpop.eup %2748 }
0x14ad   :  { %v1574_v56 = vpop.permute.xlu1 %1573 }
0x14ae   :  { %v1576_v14 = vadd.f32 %v1574_v56, %v1570_v10 }
0x14b0   :  { %2750 = vtanh.f32 %v1576_v14  ;;  %v1678_v34 = vrot.slane %v1576_v14, 6 }
0x14ba   :  { %v2751_v15 = vpop.eup %2750 }
0x14bb   :  { %v1578_v46 = vmul.f32 %v2751_v15, %v2749_v27 }
0x14bd   :  { %v1580_v48 = vrot.slane %v1578_v46, 4 }
0x14bf   :  { %1581 = vrot.lane.b32.xlu0 %v1580_v48, %s2837_s3 }
0x1531   :  { %v1582_v50 = vpop.permute.xlu0 %1581 }
0x1532   :  { %2278 = vmatmul.mubr.msk.f32.vlgmr.msra.gmra.mrb[14].mxu1 %vm196_vm5, %v1582_v50 }
0x1533   :  { %2558 = vmatpush1.bf16.msra.mxu1 %v3242_v28  ;;  %1876 = vmatprep.mubr.f32.mxu1 %v2836_v7 }
0x1534   :  { %2560 = vmatprep.subr.bf16.mxu1 %v3256_v35 }
0x1537   :  { %2562 = vmatpush1.bf16.msra.mxu1 %v3272_v41 }
0x1538   :  { %2564 = vmatprep.subr.bf16.mxu1 %v3283_v43 }
0x153b   :  { %2566 = vmatpush1.bf16.msra.mxu1 %v3292_v49 }
0x153c   :  { %2568 = vmatprep.subr.bf16.mxu1 %v3302_v18 }
0x153f   :  { %2570 = vmatpush1.bf16.msra.mxu1 %v3310_v29 }
0x1540   :  { %2588 = vmatprep.subr.bf16.mxu1 %v3231_v21 }
0x1605   :  { %v1651_v51 = vpop.f32.mrb[14].mxu1 }
0x1606   :  { %v1658_v13 = vrot.slane %v1651_v51, 2  ;;  %v1653_v52 = vpop.f32.mrb[15].mxu1 }
0x1607   :  { %v1659_v25 = vrot.slane %v1653_v52, 2 }
0x1608   :  { %v1662_v47 = vadd.f32 %v1658_v13, %v3369_v24 }
0x1609   :  { %v1663_v3 = vadd.f32 %v1659_v25, %v3378_v30 }
0x160a   :  { %v2279_v53 = vmul.f32 -1.442695, %v1662_v47 }
0x160b   :  { %v2280_v21 = vmul.f32 -1.442695, %v1663_v3 }
0x160c   :  { %2752 = vpow2.f32 %v2279_v53 }
0x160d   :  { %2754 = vtanh.f32 %v1663_v3 }
0x1616   :  { %v2753_v33 = vpop.eup %2752 }
0x1617   :  { %v1667_v9 = vadd.f32 1.0, %v2753_v33  ;;  %v2755_v55 = vpop.eup %2754 }
0x1619   :  { %2756 = vrcp.f32 %v1667_v9 }
0x161a   :  { %2758 = vpow2.f32 %v2280_v21 }
0x1623   :  { %v2757_v57 = vpop.eup %2756 }
0x1624   :  { %v1681_v38 = vmul.f32 %v2757_v57, %v2755_v55  ;;  %v1680_v58 = vmul.f32 %v2757_v57, %v1678_v34  ;;  %v2759_v59 = vpop.eup %2758 }
0x1625   :  { %v1674_v24 = vadd.f32 1.0, %v2759_v59 }
0x1626   :  { %1683 = vrot.lane.b32.xlu1 %v1681_v38, %s2837_s3 }
0x1627   :  { %2760 = vrcp.f32 %v1674_v24 }
0x1631   :  { %v2761_v30 = vpop.eup %2760 }
0x1698   :  { %v1684_v60 = vpop.permute.xlu1 %1683 }
0x1699   :  { %v1686_v61 = vadd.f32 %v1684_v60, %v1680_v58 }
0x169b   :  { %2762 = vtanh.f32 %v1686_v61  ;;  %v1790_v19 = vrot.slane %v1686_v61, 6 }
0x16a5   :  { %v2763_v62 = vpop.eup %2762 }
0x16a6   :  { %v1688_v63 = vmul.f32 %v2763_v62, %v2761_v30 }
0x16a8   :  { %v1698_v45 = vrot.slane %v1688_v63, 6 }
0x16aa   :  { %1699 = vrot.lane.b32.xlu0 %v1698_v45, %s2837_s3 }
0x171c   :  { %v1700_v0 = vpop.permute.xlu0 %1699 }
0x171d   :  { %2281 = vmatmul.mubr.msk.f32.vlgmr.msra.gmra.mrb[16].mxu0 %vm196_vm5, %v1700_v0 }
0x171e   :  { %2574 = vmatpush1.bf16.msra.mxu0 %v3242_v28  ;;  %1986 = vmatprep.mubr.f32.mxu0 %v2836_v7 }
0x171f   :  { %2576 = vmatprep.subr.bf16.mxu0 %v3256_v35 }
0x1722   :  { %2578 = vmatpush1.bf16.msra.mxu0 %v3272_v41 }
0x1723   :  { %2580 = vmatprep.subr.bf16.mxu0 %v3283_v43 }
0x1726   :  { %2582 = vmatpush1.bf16.msra.mxu0 %v3292_v49 }
0x1727   :  { %2584 = vmatprep.subr.bf16.mxu0 %v3302_v18 }
0x172a   :  { %2586 = vmatpush1.bf16.msra.mxu0 %v3310_v29 }
0x17f0   :  { %v1769_v12 = vpop.f32.mrb[16].mxu0 }
0x17f1   :  { %v1774_v1 = vadd.f32 %v1769_v12, %v3349_v42  ;;  %v1771_v4 = vpop.f32.mrb[17].mxu0 }
0x17f2   :  { %v1775_v11 = vadd.f32 %v1771_v4, %v3357_v20 }
0x17f3   :  { %v2282_v17 = vmul.f32 -1.442695, %v1774_v1 }
0x17f4   :  { %v2283_v32 = vmul.f32 -1.442695, %v1775_v11 }
0x17f5   :  { %2764 = vpow2.f32 %v2282_v17 }
0x17f6   :  { %2766 = vtanh.f32 %v1775_v11 }
0x17ff   :  { %v2765_v8 = vpop.eup %2764 }
0x1800   :  { %v1779_v16 = vadd.f32 1.0, %v2765_v8  ;;  %v2767_v44 = vpop.eup %2766 }
0x1802   :  { %2768 = vrcp.f32 %v1779_v16 }
0x1803   :  { %2770 = vpow2.f32 %v2283_v32 }
0x180c   :  { %v2769_v26 = vpop.eup %2768 }
0x180d   :  { %v1793_v31 = vmul.f32 %v2769_v26, %v2767_v44  ;;  %v1792_v2 = vmul.f32 %v2769_v26, %v1790_v19  ;;  %v2771_v6 = vpop.eup %2770 }
0x180e   :  { %v1786_v54 = vadd.f32 1.0, %v2771_v6 }
0x180f   :  { %1795 = vrot.lane.b32.xlu1 %v1793_v31, %s2837_s3 }
0x1810   :  { %2772 = vrcp.f32 %v1786_v54 }
0x181a   :  { %v2773_v10 = vpop.eup %2772 }
0x1881   :  { %v1796_v36 = vpop.permute.xlu1 %1795 }
0x1882   :  { %v1798_v37 = vadd.f32 %v1796_v36, %v1792_v2 }
0x1884   :  { %2774 = vtanh.f32 %v1798_v37 }
0x188e   :  { %v2775_v39 = vpop.eup %2774 }
0x188f   :  { %v1800_v5 = vmul.f32 %v2775_v39, %v2773_v10 }
0x1891   :  { %1808 = vrot.lane.b32.xlu0 %v1800_v5, %s2837_s3 }
0x1903   :  { %v1809_v23 = vpop.permute.xlu0 %1808 }
0x1904   :  { %2284 = vmatmul.mubr.msk.f32.vlgmr.msra.gmra.mrb[16].mxu1 %vm196_vm5, %v1809_v23 }
0x1905   :  { %2590 = vmatpush1.bf16.msra.mxu1 %v3242_v28  ;;  %2096 = vmatprep.mubr.f32.mxu1 %v2836_v7 }
0x1906   :  { %2592 = vmatprep.subr.bf16.mxu1 %v3256_v35 }
0x1909   :  { %2594 = vmatpush1.bf16.msra.mxu1 %v3272_v41 }
0x190a   :  { %2596 = vmatprep.subr.bf16.mxu1 %v3283_v43 }
0x190d   :  { %2598 = vmatpush1.bf16.msra.mxu1 %v3292_v49  ;;  %v1905_v49 = vrot.slane %v1798_v37, 6 }
0x190e   :  { %2600 = vmatprep.subr.bf16.mxu1 %v3302_v18 }
0x1911   :  { %2602 = vmatpush1.bf16.msra.mxu1 %v3310_v29 }
0x19d7   :  { %v1878_v56 = vpop.f32.mrb[16].mxu1 }
0x19d8   :  { %v1885_v14 = vrot.slane %v1878_v56, 6  ;;  %v1880_v27 = vpop.f32.mrb[17].mxu1 }
0x19d9   :  { %v1886_v46 = vrot.slane %v1880_v27, 6  ;;  %v2838_v27 = vmov 0.0|0.0  }
0x19da   :  { %v1889_v15 = vadd.f32 %v1885_v14, %v3353_v40  ;;  %v2137_v14 = vld [vmem:[%s3509_s7 + $0x8] sm:$0xff]  ;;  %2603 = vmatprep.subr.bf16.mxu0 %v2838_v27 }
0x19db   :  { %v1890_v35 = vadd.f32 %v1886_v46, %v3361_v22 }
0x19dc   :  { %v2285_v28 = vmul.f32 -1.442695, %v1889_v15 }
0x19dd   :  { %v2286_v29 = vmul.f32 -1.442695, %v1890_v35 }
0x19de   :  { %2776 = vpow2.f32 %v2285_v28  ;;  %v2139_v28 = vld [vmem:[%s3509_s7 + $0x18] sm:$0xff] }
0x19df   :  { %2778 = vtanh.f32 %v1890_v35  ;;  %v2140_v35 = vld [vmem:[%s3509_s7 + $0x20] sm:$0xff] }
0x19e8   :  { %v2777_v48 = vpop.eup %2776 }
0x19e9   :  { %v1894_v41 = vadd.f32 1.0, %v2777_v48  ;;  %v2779_v43 = vpop.eup %2778  ;;  %v2141_v48 = vld [vmem:[%s3509_s7 + $0x28] sm:$0xff] }
0x19eb   :  { %2780 = vrcp.f32 %v1894_v41  ;;  %v2610_v41 = vpack.c.bf16 %v2141_v48, %v2140_v35 }
0x19ec   :  { %2782 = vpow2.f32 %v2286_v29 }
0x19f5   :  { %v2781_v50 = vpop.eup %2780 }
0x19f6   :  { %v1908_v18 = vmul.f32 %v2781_v50, %v2779_v43  ;;  %v1907_v51 = vmul.f32 %v2781_v50, %v1905_v49  ;;  %v2783_v13 = vpop.eup %2782  ;;  %v2142_v43 = vld [vmem:[%s3509_s7 + $0x30] sm:$0xff] }
0x19f7   :  { %v1901_v52 = vadd.f32 1.0, %v2783_v13 }
0x19f8   :  { %1910 = vrot.lane.b32.xlu1 %v1908_v18, %s2837_s3 }
0x19f9   :  { %2784 = vrcp.f32 %v1901_v52 }
0x1a03   :  { %v2785_v25 = vpop.eup %2784 }
0x1a6a   :  { %v1911_v47 = vpop.permute.xlu1 %1910 }
0x1a6b   :  { %v1913_v53 = vadd.f32 %v1911_v47, %v1907_v51 }
0x1a6d   :  { %2786 = vtanh.f32 %v1913_v53  ;;  %v2015_v62 = vrot.slane %v1913_v53, 6 }
0x1a77   :  { %v2787_v3 = vpop.eup %2786 }
0x1a78   :  { %v1915_v33 = vmul.f32 %v2787_v3, %v2785_v25 }
0x1a7a   :  { %v1917_v9 = vrot.slane %v1915_v33, 2  ;;  %v2293_v33 = vld [vmem:[%s3510_s8] ss:$0 sm:$0xff] }
0x1a7c   :  { %1918 = vrot.lane.b32.xlu0 %v1917_v9, %s2837_s3 }
0x1aee   :  { %v1919_v55 = vpop.permute.xlu0 %1918 }
0x1aef   :  { %2287 = vmatmul.mubr.msk.f32.vlgmr.msra.gmra.mrb[18].mxu0 %vm196_vm5, %v1919_v55 }
0x1af0   :  { %2320 = vmatprep.mubr.msk.f32.mxu0 %vm2839_vm12, %v2836_v7  ;;  %v2143_v7 = vld [vmem:[%s3509_s7 + $0x38] sm:$0xff] }
0x1af1   :  { %v2613_v49 = vpack.c.bf16 %v2143_v7, %v2142_v43 }
0x1bc2   :  { %v1988_v34 = vpop.f32.mrb[18].mxu0 }
0x1bc3   :  { %v1995_v57 = vrot.slane %v1988_v34, 4  ;;  %v1990_v38 = vpop.f32.mrb[19].mxu0 }
0x1bc4   :  { %v1996_v59 = vrot.slane %v1990_v38, 4 }
0x1bc5   :  { %v1999_v58 = vadd.f32 %v1995_v57, %v3349_v42 }
0x1bc6   :  { %v2000_v24 = vadd.f32 %v1996_v59, %v3357_v20 }
0x1bc7   :  { %v2288_v21 = vmul.f32 -1.442695, %v1999_v58 }
0x1bc8   :  { %v2289_v12 = vmul.f32 -1.442695, %v2000_v24 }
0x1bc9   :  { %2788 = vpow2.f32 %v2288_v21 }
0x1bca   :  { %2790 = vtanh.f32 %v2000_v24 }
0x1bd3   :  { %v2789_v60 = vpop.eup %2788 }
0x1bd4   :  { %v2004_v61 = vadd.f32 1.0, %v2789_v60  ;;  %v2791_v30 = vpop.eup %2790 }
0x1bd6   :  { %2792 = vrcp.f32 %v2004_v61 }
0x1bd7   :  { %2794 = vpow2.f32 %v2289_v12 }
0x1be0   :  { %v2793_v63 = vpop.eup %2792 }
0x1be1   :  { %v2018_v45 = vmul.f32 %v2793_v63, %v2791_v30  ;;  %v2017_v0 = vmul.f32 %v2793_v63, %v2015_v62  ;;  %v2795_v1 = vpop.eup %2794 }
0x1be2   :  { %v2011_v42 = vadd.f32 1.0, %v2795_v1 }
0x1be3   :  { %2020 = vrot.lane.b32.xlu1 %v2018_v45, %s2837_s3 }
0x1be4   :  { %2796 = vrcp.f32 %v2011_v42 }
0x1bee   :  { %v2797_v20 = vpop.eup %2796 }
0x1c55   :  { %v2021_v4 = vpop.permute.xlu1 %2020 }
0x1c56   :  { %v2023_v17 = vadd.f32 %v2021_v4, %v2017_v0 }
0x1c58   :  { %2798 = vtanh.f32 %v2023_v17  ;;  %v2125_v39 = vrot.slane %v2023_v17, 6 }
0x1c62   :  { %v2799_v11 = vpop.eup %2798 }
0x1c63   :  { %v2025_v8 = vmul.f32 %v2799_v11, %v2797_v20 }
0x1c65   :  { %v2027_v16 = vrot.slane %v2025_v8, 4 }
0x1c67   :  { %2028 = vrot.lane.b32.xlu0 %v2027_v16, %s2837_s3 }
0x1cd9   :  { %v2029_v44 = vpop.permute.xlu0 %2028 }
0x1cda   :  { %2290 = vmatmul.mubr.msk.f32.vlgmr.msra.gmra.mrb[18].mxu1 %vm196_vm5, %v2029_v44 }
0x1dad   :  { %v2098_v19 = vpop.f32.mrb[18].mxu1 }
0x1dae   :  { %v2105_v26 = vrot.slane %v2098_v19, 2  ;;  %v2100_v31 = vpop.f32.mrb[19].mxu1 }
0x1daf   :  { %v2106_v6 = vrot.slane %v2100_v31, 2 }
0x1db0   :  { %v2109_v2 = vadd.f32 %v2105_v26, %v3353_v40  ;;  %v2136_v40 = vld [vmem:[%s3509_s7] sm:$0xff] }
0x1db1   :  { %v2110_v54 = vadd.f32 %v2106_v6, %v3361_v22  ;;  %v2138_v22 = vld [vmem:[%s3509_s7 + $0x10] sm:$0xff]  ;;  %v2604_v15 = vpack.c.bf16 %v2137_v14, %v2136_v40 }
0x1db2   :  { %v2291_v32 = vmul.f32 -1.442695, %v2109_v2  ;;  %v2607_v46 = vpack.c.bf16 %v2139_v28, %v2138_v22 }
0x1db3   :  { %2605 = vmatpush3.bf16.msra.mxu0 %v2604_v15  ;;  %v2292_v50 = vmul.f32 -1.442695, %v2110_v54 }
0x1db4   :  { %2800 = vpow2.f32 %v2291_v32  ;;  %2606 = vmatprep.subr.bf16.mxu0 %v2838_v27 }
0x1db5   :  { %2802 = vtanh.f32 %v2110_v54 }
0x1db7   :  { %2608 = vmatpush3.bf16.msra.mxu0 %v2607_v46 }
0x1db8   :  { %2609 = vmatprep.subr.bf16.mxu0 %v2838_v27 }
0x1dbb   :  { %2611 = vmatpush3.bf16.msra.mxu0 %v2610_v41 }
0x1dbc   :  { %2612 = vmatprep.subr.bf16.mxu0 %v2838_v27 }
0x1dbe   :  { %v2801_v36 = vpop.eup %2800 }
0x1dbf   :  { %v2114_v37 = vadd.f32 1.0, %v2801_v36  ;;  %v2803_v10 = vpop.eup %2802  ;;  %2614 = vmatpush3.bf16.msra.mxu0 %v2613_v49 }
0x1dc1   :  { %2804 = vrcp.f32 %v2114_v37 }
0x1dc2   :  { %2806 = vpow2.f32 %v2292_v50 }
0x1dcb   :  { %v2805_v5 = vpop.eup %2804 }
0x1dcc   :  { %v2128_v23 = vmul.f32 %v2805_v5, %v2803_v10  ;;  %v2127_v56 = vmul.f32 %v2805_v5, %v2125_v39  ;;  %v2807_v18 = vpop.eup %2806 }
0x1dcd   :  { %v2121_v51 = vadd.f32 1.0, %v2807_v18 }
0x1dce   :  { %2130 = vrot.lane.b32.xlu1 %v2128_v23, %s2837_s3 }
0x1dcf   :  { %2808 = vrcp.f32 %v2121_v51 }
0x1dd9   :  { %v2809_v52 = vpop.eup %2808 }
0x1e40   :  { %v2131_v29 = vpop.permute.xlu1 %2130 }
0x1e41   :  { %v2133_v13 = vadd.f32 %v2131_v29, %v2127_v56 }
0x1e43   :  { %2810 = vtanh.f32 %v2133_v13 }
0x1e4d   :  { %v2811_v47 = vpop.eup %2810 }
0x1e4e   :  { %v2135_v53 = vmul.f32 %v2811_v47, %v2809_v52 }
0x1e50   :  { %v2152_v25 = vrot.slane %v2135_v53, 6 }
0x1e52   :  { %2153 = vrot.lane.b32.xlu0 %v2152_v25, %s2837_s3 }
0x1ec4   :  { %v2154_v3 = vpop.permute.xlu0 %2153 }
0x1ec5   :  { %2321 = vmatmul.mubr.msk.f32.vlgmr.msra.gmra.mrb[20].mxu0 %vm196_vm5, %v2154_v3 }
0x1f98   :  { %v2223_v9 = vpop.f32.mrb[20].mxu0 }
0x1f99   :  { %v2224_v55 = vadd.f32 %v2293_v33, %v2223_v9  ;;  %v2322_v34 = vpop.f32.mrb[21].mxu0 }
0x1f9b   :  { %2228 = vst.msk [vmem:[#allocation3] sm:$0x3] %vm2227_vm13, %v2224_v55 }
0x1f9c   :  { %2823 = shalt.err (!%p2820_p4)
}
0x1f9d   :  { %s2824_s28 = scalar_lea.hbm %s3511_s9, 32 }
0x1f9e   :  { %p2825_p5 = scmp.ne.s32.totalorder %s3511_s9, %s2824_s28  ;;  %p2828_p6 = scmp.lt.u32.totalorder %s2824_s28, %s3511_s9 }
0x1fa0   :  { %p2830_p7 = pnand %p2828_p6, %p2825_p5 }
0x1fa2   :  { %2833 = shalt.err (!%p2830_p7)
}
0x1fa3   :  { %2238 = dma.vmem_to_hbm [thread:$0]  %s2236_s25, 32, %s3511_s9, [#allocation4]  }
0x1fa4   :  { %2834 = dma.done.wait [#allocation4], 32  }
0x1fa5   :  { %2835 = vsyncadd [#allocation4], 4294967264 }
0x1fa6   :  { %2242 = vsyncpa [#allocation4], 1 }

</bundles_post_ra>
